<compile_context>
chip_gen: v7x
topology: tpu7x:2x2x1
jax: 0.10.0
libtpu: 0.0.40
codegen_flags: <defaults>
</compile_context>

<pallas_src>
import jax
import jax.numpy as jnp
from jax import lax
from jax.experimental import pallas as pl
from jax.experimental.pallas import tpu as pltpu


# ----------------------------- helpers ---------------------------------------

def _block_diag(blocks):
    """blocks: (G, a, b) per-group weights -> (G*a, G*b) block-diagonal."""
    G, a, b = blocks.shape
    out = jnp.zeros((G * a, G * b), blocks.dtype)
    for g in range(G):
        out = out.at[g * a:(g + 1) * a, g * b:(g + 1) * b].set(blocks[g])
    return out


def _fold_bn(gamma, beta, mean, var, eps):
    s = gamma / jnp.sqrt(var + eps)      # per-output-channel scale
    t = beta - mean * s                  # per-output-channel bias
    return s, t


# ----------------------- fused Bottleneck Pallas kernel ----------------------

def _bottleneck_forward_nhwc(x_nhwc, w1, t1, w2, t2, w3, t3):
    """x_nhwc: (N, H, W, Cin) float32.  Returns (N, H, W, Cout) float32."""
    N, H, W, Cin = x_nhwc.shape
    Cmid = w1.shape[1]
    Cout = w3.shape[1]

    # Spatial zero-padding: 2 rows top/bottom, 1 col left/right, then flatten
    # the spatial grid so every in-kernel tensor is 2-D (rows, channels).
    Wp, Hp = W + 2, H + 4
    P, L, base = Hp * Wp, H * Wp, 2 * Wp

    xp = jnp.pad(x_nhwc, ((0, 0), (2, 2), (1, 1), (0, 0))).reshape(N, P, Cin)

    # Interior mask (1 inside the true HxW image, 0 on the padded border),
    # precomputed host-side so the kernel needs no integer div/mod.
    rows = jnp.arange(Hp)[:, None]
    cols = jnp.arange(Wp)[None, :]
    inside = (rows >= 2) & (rows <= H + 1) & (cols >= 1) & (cols <= W)
    mask = inside.astype(jnp.float32).reshape(P, 1)

    def kernel(x_ref, m_ref, w1_ref, t1_ref, w2_ref, t2_ref, w3_ref, t3_ref,
               o_ref):
        xin = x_ref[0]                                   # (P, Cin) f32
        m = m_ref[...]                                   # (P, 1)

        # conv1 (grouped 1x1 == block-diag matmul) + folded BN1 + ReLU.
        # Re-zero the padded border so conv2's implicit zero padding holds.
        y1 = jnp.maximum(
            jnp.dot(xin, w1_ref[...], preferred_element_type=jnp.float32)
            + t1_ref[...], 0.0) * m                      # (P, Cmid)

        # conv2 (grouped 3x3, stride 1, pad 1) as 9 shifted matmuls, f32 acc.
        acc = jnp.zeros((L, Cmid), jnp.float32)
        for dy in range(3):
            for dx in range(3):
                start = base + (dy - 1) * Wp + (dx - 1)
                acc = acc + jnp.dot(
                    y1[start:start + L, :], w2_ref[dy * 3 + dx],
                    preferred_element_type=jnp.float32)
        y2 = jnp.maximum(acc + t2_ref[...], 0.0)         # (L, Cmid)

        # conv3 (grouped 1x1) + folded BN3 + residual + final ReLU.
        y3 = jnp.dot(y2, w3_ref[...],
                     preferred_element_type=jnp.float32) + t3_ref[...]
        identity = xin[base:base + L, :]                 # (L, Cout == Cin)
        o_ref[0] = jnp.maximum(y3 + identity, 0.0).astype(o_ref.dtype)

    out_flat = pl.pallas_call(
        kernel,
        out_shape=jax.ShapeDtypeStruct((N, L, Cout), x_nhwc.dtype),
        grid_spec=pl.GridSpec(
            grid=(N,),
            in_specs=[
                pl.BlockSpec((1, P, Cin), lambda n: (n, 0, 0)),      # x (per batch)
                pl.BlockSpec((P, 1), lambda n: (0, 0)),              # border mask
                pl.BlockSpec((Cin, Cmid), lambda n: (0, 0)),         # W1 (resident)
                pl.BlockSpec((1, Cmid), lambda n: (0, 0)),           # t1
                pl.BlockSpec((9, Cmid, Cmid), lambda n: (0, 0, 0)),  # W2 taps
                pl.BlockSpec((1, Cmid), lambda n: (0, 0)),           # t2
                pl.BlockSpec((Cmid, Cout), lambda n: (0, 0)),        # W3
                pl.BlockSpec((1, Cout), lambda n: (0, 0)),           # t3
            ],
            out_specs=pl.BlockSpec((1, L, Cout), lambda n: (n, 0, 0)),
        ),
        compiler_params=pltpu.CompilerParams(
            dimension_semantics=("parallel",)),
    )(xp, mask, w1, t1, w2, t2, w3, t3)

    # Drop the padded border columns; rows already restricted to the interior.
    return out_flat.reshape(N, H, Wp, Cout)[:, :, 1:1 + W, :]


# --------------------------------- module ------------------------------------

class Bottleneck:
    expansion = 4

    def __init__(self, inplanes, planes, key, groups=6, stride=1,
                 downsample=None, eps=1e-5):
        assert stride == 1 and downsample is None, \
            "only the default stride=1 / downsample=None path is implemented"
        assert inplanes % groups == 0 and planes % groups == 0
        assert (planes * self.expansion) % groups == 0
        assert inplanes == planes * self.expansion, \
            "residual add requires inplanes == planes * expansion"

        self.groups, self.eps = groups, eps
        G = groups
        cin_g = inplanes // G
        cmid_g = planes // G
        cout_g = (planes * self.expansion) // G

        ks = jax.random.split(key, 6)
        # Per-group conv weights (no bias, as in the PyTorch module).
        self.w1g = jax.random.normal(ks[0], (G, cin_g, cmid_g),
                                     jnp.float32) / (cin_g ** 0.5)
        self.w2g = jax.random.normal(ks[1], (G, 3, 3, cmid_g, cmid_g),
                                     jnp.float32) / ((9 * cmid_g) ** 0.5)
        self.w3g = jax.random.normal(ks[2], (G, cmid_g, cout_g),
                                     jnp.float32) / (cmid_g ** 0.5)

        def bn_params(k, C):
            kg, kb, km, kv = jax.random.split(k, 4)
            gamma = 1.0 + 0.1 * jax.random.normal(kg, (C,), jnp.float32)
            beta = 0.1 * jax.random.normal(kb, (C,), jnp.float32)
            mean = 0.1 * jax.random.normal(km, (C,), jnp.float32)
            var = 0.5 + jax.random.uniform(kv, (C,), jnp.float32)
            return gamma, beta, mean, var

        self.bn1 = bn_params(ks[3], planes)
        self.bn2 = bn_params(ks[4], planes)
        self.bn3 = bn_params(ks[5], planes * self.expansion)

        # ---- kernel-side parameters: block-diagonal weights with BN folded ----
        s1, t1 = _fold_bn(*self.bn1, eps)
        s2, t2 = _fold_bn(*self.bn2, eps)
        s3, t3 = _fold_bn(*self.bn3, eps)

        self.w1 = _block_diag(self.w1g) * s1[None, :]
        self.t1 = t1.reshape(1, -1)
        self.w2 = jnp.stack(
            [_block_diag(self.w2g[:, dy, dx]) for dy in range(3)
             for dx in range(3)]) * s2[None, None, :]
        self.t2 = t2.reshape(1, -1)
        self.w3 = _block_diag(self.w3g) * s3[None, :]
        self.t3 = t3.reshape(1, -1)

        # ---- reference-side (PyTorch OIHW layout) grouped-conv kernels ----
        self.k1_oihw = jnp.transpose(self.w1g, (0, 2, 1)).reshape(
            planes, cin_g)[:, :, None, None]
        self.k2_oihw = jnp.transpose(self.w2g, (0, 4, 3, 1, 2)).reshape(
            planes, cmid_g, 3, 3)
        self.k3_oihw = jnp.transpose(self.w3g, (0, 2, 1)).reshape(
            planes * self.expansion, cmid_g)[:, :, None, None]

    def __call__(self, x_nchw):
        x_nhwc = jnp.transpose(x_nchw, (0, 2, 3, 1))
        out_nhwc = _bottleneck_forward_nhwc(
            x_nhwc, self.w1, self.t1, self.w2, self.t2, self.w3, self.t3)
        return jnp.transpose(out_nhwc, (0, 3, 1, 2))


# --------------------------- pure-JAX reference -------------------------------

def bottleneck_reference(x, mod):
    """Ground-truth forward in NCHW via lax grouped convolutions."""
    dn = ("NCHW", "OIHW", "NCHW")
    G = mod.groups

    def bn(y, p):
        gamma, beta, mean, var = (a.reshape(1, -1, 1, 1) for a in p)
        return (y - mean) / jnp.sqrt(var + mod.eps) * gamma + beta

    out = lax.conv_general_dilated(x, mod.k1_oihw, (1, 1), "VALID",
                                   dimension_numbers=dn,
                                   feature_group_count=G)
    out = jnp.maximum(bn(out, mod.bn1), 0.0)
    out = lax.conv_general_dilated(out, mod.k2_oihw, (1, 1), ((1, 1), (1, 1)),
                                   dimension_numbers=dn,
                                   feature_group_count=G)
    out = jnp.maximum(bn(out, mod.bn2), 0.0)
    out = lax.conv_general_dilated(out, mod.k3_oihw, (1, 1), "VALID",
                                   dimension_numbers=dn,
                                   feature_group_count=G)
    out = bn(out, mod.bn3)
    return jnp.maximum(out + x, 0.0)


# ----------------------------------- main -------------------------------------

if __name__ == "__main__":
    key = jax.random.PRNGKey(0)
    kx, kp = jax.random.split(key)

    # groups=6 => channels divisible by 6; inplanes == planes*4 for residual.
    N, inplanes, planes, H, W = 2, 48, 12, 14, 14

    x = jax.random.normal(kx, (N, inplanes, H, W), dtype=jnp.float32)
    module = Bottleneck(inplanes, planes, kp)

    out = jax.block_until_ready(module(x))
    ref = bottleneck_reference(x, module)

    assert out.shape == (N, planes * Bottleneck.expansion, H, W)
    max_err = float(jnp.max(jnp.abs(out - ref)))
    assert jnp.allclose(out, ref, atol=1e-4, rtol=1e-4), max_err
    print("KERNEL_OK")
</pallas_src>

<mosaic_0001>
module attributes {stable_mosaic.version = 11 : i64} {
  func.func @kernel(%arg0: i32, %arg1: memref<1x288x48xf32, #tpu.memory_space<vmem>>, %arg2: memref<288x1xf32, #tpu.memory_space<vmem>>, %arg3: memref<48x12xf32, #tpu.memory_space<vmem>>, %arg4: memref<1x12xf32, #tpu.memory_space<vmem>>, %arg5: memref<9x12x12xf32, #tpu.memory_space<vmem>>, %arg6: memref<1x12xf32, #tpu.memory_space<vmem>>, %arg7: memref<12x48xf32, #tpu.memory_space<vmem>>, %arg8: memref<1x48xf32, #tpu.memory_space<vmem>>, %arg9: memref<1x224x48xf32, #tpu.memory_space<vmem>>) attributes {dimension_semantics = [#tpu.dimension_semantics<parallel>], iteration_bounds = array<i64: 2>, scalar_prefetch = 0 : i64, scratch_operands = 0 : i64, tpu.core_type = #tpu.core_type<tc>, window_params = [{transform_indices = @transform_0, window_bounds = array<i64: 1, 288, 48>}, {pipeline_mode = #tpu.pipeline_mode<synchronous>, transform_indices = @transform_1, window_bounds = array<i64: 288, 1>}, {pipeline_mode = #tpu.pipeline_mode<synchronous>, transform_indices = @transform_2, window_bounds = array<i64: 48, 12>}, {pipeline_mode = #tpu.pipeline_mode<synchronous>, transform_indices = @transform_3, window_bounds = array<i64: 1, 12>}, {pipeline_mode = #tpu.pipeline_mode<synchronous>, transform_indices = @transform_4, window_bounds = array<i64: 9, 12, 12>}, {pipeline_mode = #tpu.pipeline_mode<synchronous>, transform_indices = @transform_5, window_bounds = array<i64: 1, 12>}, {pipeline_mode = #tpu.pipeline_mode<synchronous>, transform_indices = @transform_6, window_bounds = array<i64: 12, 48>}, {pipeline_mode = #tpu.pipeline_mode<synchronous>, transform_indices = @transform_7, window_bounds = array<i64: 1, 48>}, {transform_indices = @transform_8, window_bounds = array<i64: 1, 224, 48>}]} {
    %c0 = arith.constant 0 : index
    %c0_0 = arith.constant 0 : index
    %c0_1 = arith.constant 0 : index
    %0 = vector.load %arg1[%c0, %c0_0, %c0_1] : memref<1x288x48xf32, #tpu.memory_space<vmem>>, vector<1x288x48xf32>
    %1 = vector.shape_cast %0 : vector<1x288x48xf32> to vector<288x48xf32>
    %c0_2 = arith.constant 0 : index
    %c0_3 = arith.constant 0 : index
    %2 = vector.load %arg2[%c0_2, %c0_3] : memref<288x1xf32, #tpu.memory_space<vmem>>, vector<288x1xf32>
    %c0_4 = arith.constant 0 : index
    %c0_5 = arith.constant 0 : index
    %3 = vector.load %arg3[%c0_4, %c0_5] : memref<48x12xf32, #tpu.memory_space<vmem>>, vector<48x12xf32>
    %cst = arith.constant dense<0.000000e+00> : vector<288x12xf32>
    %4 = tpu.matmul %1, %3, %cst {dimension_numbers = #tpu.dot_dimension_numbers<[1], [0], [0], [1], [0, 0, 1, 1], [], []>} : vector<288x48xf32>, vector<48x12xf32>, vector<288x12xf32> -> vector<288x12xf32>
    %c0_6 = arith.constant 0 : index
    %c0_7 = arith.constant 0 : index
    %5 = vector.load %arg4[%c0_6, %c0_7] : memref<1x12xf32, #tpu.memory_space<vmem>>, vector<1x12xf32>
    %6 = vector.broadcast %5 : vector<1x12xf32> to vector<288x12xf32>
    %7 = arith.addf %4, %6 : vector<288x12xf32>
    %cst_8 = arith.constant 0.000000e+00 : f32
    %8 = vector.broadcast %cst_8 : f32 to vector<288x12xf32>
    %9 = arith.maximumf %7, %8 : vector<288x12xf32>
    %10 = vector.broadcast %2 : vector<288x1xf32> to vector<288x12xf32>
    %11 = arith.mulf %9, %10 : vector<288x12xf32>
    %cst_9 = arith.constant 0.000000e+00 : f32
    %12 = vector.broadcast %cst_9 : f32 to vector<224x12xf32>
    %13 = vector.extract_strided_slice %11 {offsets = [15, 0], sizes = [224, 12], strides = [1, 1]} : vector<288x12xf32> to vector<224x12xf32>
    %c0_10 = arith.constant 0 : index
    %c0_11 = arith.constant 0 : index
    %c0_12 = arith.constant 0 : index
    %14 = vector.load %arg5[%c0_10, %c0_11, %c0_12] : memref<9x12x12xf32, #tpu.memory_space<vmem>>, vector<1x12x12xf32>
    %15 = vector.shape_cast %14 : vector<1x12x12xf32> to vector<12x12xf32>
    %cst_13 = arith.constant dense<0.000000e+00> : vector<224x12xf32>
    %16 = tpu.matmul %13, %15, %cst_13 {dimension_numbers = #tpu.dot_dimension_numbers<[1], [0], [0], [1], [0, 0, 1, 1], [], []>} : vector<224x12xf32>, vector<12x12xf32>, vector<224x12xf32> -> vector<224x12xf32>
    %17 = arith.addf %12, %16 : vector<224x12xf32>
    %18 = vector.extract_strided_slice %11 {offsets = [16, 0], sizes = [224, 12], strides = [1, 1]} : vector<288x12xf32> to vector<224x12xf32>
    %c1 = arith.constant 1 : index
    %c0_14 = arith.constant 0 : index
    %c0_15 = arith.constant 0 : index
    %19 = vector.load %arg5[%c1, %c0_14, %c0_15] : memref<9x12x12xf32, #tpu.memory_space<vmem>>, vector<1x12x12xf32>
    %20 = vector.shape_cast %19 : vector<1x12x12xf32> to vector<12x12xf32>
    %cst_16 = arith.constant dense<0.000000e+00> : vector<224x12xf32>
    %21 = tpu.matmul %18, %20, %cst_16 {dimension_numbers = #tpu.dot_dimension_numbers<[1], [0], [0], [1], [0, 0, 1, 1], [], []>} : vector<224x12xf32>, vector<12x12xf32>, vector<224x12xf32> -> vector<224x12xf32>
    %22 = arith.addf %17, %21 : vector<224x12xf32>
    %23 = vector.extract_strided_slice %11 {offsets = [17, 0], sizes = [224, 12], strides = [1, 1]} : vector<288x12xf32> to vector<224x12xf32>
    %c2 = arith.constant 2 : index
    %c0_17 = arith.constant 0 : index
    %c0_18 = arith.constant 0 : index
    %24 = vector.load %arg5[%c2, %c0_17, %c0_18] : memref<9x12x12xf32, #tpu.memory_space<vmem>>, vector<1x12x12xf32>
    %25 = vector.shape_cast %24 : vector<1x12x12xf32> to vector<12x12xf32>
    %cst_19 = arith.constant dense<0.000000e+00> : vector<224x12xf32>
    %26 = tpu.matmul %23, %25, %cst_19 {dimension_numbers = #tpu.dot_dimension_numbers<[1], [0], [0], [1], [0, 0, 1, 1], [], []>} : vector<224x12xf32>, vector<12x12xf32>, vector<224x12xf32> -> vector<224x12xf32>
    %27 = arith.addf %22, %26 : vector<224x12xf32>
    %28 = vector.extract_strided_slice %11 {offsets = [31, 0], sizes = [224, 12], strides = [1, 1]} : vector<288x12xf32> to vector<224x12xf32>
    %c3 = arith.constant 3 : index
    %c0_20 = arith.constant 0 : index
    %c0_21 = arith.constant 0 : index
    %29 = vector.load %arg5[%c3, %c0_20, %c0_21] : memref<9x12x12xf32, #tpu.memory_space<vmem>>, vector<1x12x12xf32>
    %30 = vector.shape_cast %29 : vector<1x12x12xf32> to vector<12x12xf32>
    %cst_22 = arith.constant dense<0.000000e+00> : vector<224x12xf32>
    %31 = tpu.matmul %28, %30, %cst_22 {dimension_numbers = #tpu.dot_dimension_numbers<[1], [0], [0], [1], [0, 0, 1, 1], [], []>} : vector<224x12xf32>, vector<12x12xf32>, vector<224x12xf32> -> vector<224x12xf32>
    %32 = arith.addf %27, %31 : vector<224x12xf32>
    %33 = vector.extract_strided_slice %11 {offsets = [32, 0], sizes = [224, 12], strides = [1, 1]} : vector<288x12xf32> to vector<224x12xf32>
    %c4 = arith.constant 4 : index
    %c0_23 = arith.constant 0 : index
    %c0_24 = arith.constant 0 : index
    %34 = vector.load %arg5[%c4, %c0_23, %c0_24] : memref<9x12x12xf32, #tpu.memory_space<vmem>>, vector<1x12x12xf32>
    %35 = vector.shape_cast %34 : vector<1x12x12xf32> to vector<12x12xf32>
    %cst_25 = arith.constant dense<0.000000e+00> : vector<224x12xf32>
    %36 = tpu.matmul %33, %35, %cst_25 {dimension_numbers = #tpu.dot_dimension_numbers<[1], [0], [0], [1], [0, 0, 1, 1], [], []>} : vector<224x12xf32>, vector<12x12xf32>, vector<224x12xf32> -> vector<224x12xf32>
    %37 = arith.addf %32, %36 : vector<224x12xf32>
    %38 = vector.extract_strided_slice %11 {offsets = [33, 0], sizes = [224, 12], strides = [1, 1]} : vector<288x12xf32> to vector<224x12xf32>
    %c5 = arith.constant 5 : index
    %c0_26 = arith.constant 0 : index
    %c0_27 = arith.constant 0 : index
    %39 = vector.load %arg5[%c5, %c0_26, %c0_27] : memref<9x12x12xf32, #tpu.memory_space<vmem>>, vector<1x12x12xf32>
    %40 = vector.shape_cast %39 : vector<1x12x12xf32> to vector<12x12xf32>
    %cst_28 = arith.constant dense<0.000000e+00> : vector<224x12xf32>
    %41 = tpu.matmul %38, %40, %cst_28 {dimension_numbers = #tpu.dot_dimension_numbers<[1], [0], [0], [1], [0, 0, 1, 1], [], []>} : vector<224x12xf32>, vector<12x12xf32>, vector<224x12xf32> -> vector<224x12xf32>
    %42 = arith.addf %37, %41 : vector<224x12xf32>
    %43 = vector.extract_strided_slice %11 {offsets = [47, 0], sizes = [224, 12], strides = [1, 1]} : vector<288x12xf32> to vector<224x12xf32>
    %c6 = arith.constant 6 : index
    %c0_29 = arith.constant 0 : index
    %c0_30 = arith.constant 0 : index
    %44 = vector.load %arg5[%c6, %c0_29, %c0_30] : memref<9x12x12xf32, #tpu.memory_space<vmem>>, vector<1x12x12xf32>
    %45 = vector.shape_cast %44 : vector<1x12x12xf32> to vector<12x12xf32>
    %cst_31 = arith.constant dense<0.000000e+00> : vector<224x12xf32>
    %46 = tpu.matmul %43, %45, %cst_31 {dimension_numbers = #tpu.dot_dimension_numbers<[1], [0], [0], [1], [0, 0, 1, 1], [], []>} : vector<224x12xf32>, vector<12x12xf32>, vector<224x12xf32> -> vector<224x12xf32>
    %47 = arith.addf %42, %46 : vector<224x12xf32>
    %48 = vector.extract_strided_slice %11 {offsets = [48, 0], sizes = [224, 12], strides = [1, 1]} : vector<288x12xf32> to vector<224x12xf32>
    %c7 = arith.constant 7 : index
    %c0_32 = arith.constant 0 : index
    %c0_33 = arith.constant 0 : index
    %49 = vector.load %arg5[%c7, %c0_32, %c0_33] : memref<9x12x12xf32, #tpu.memory_space<vmem>>, vector<1x12x12xf32>
    %50 = vector.shape_cast %49 : vector<1x12x12xf32> to vector<12x12xf32>
    %cst_34 = arith.constant dense<0.000000e+00> : vector<224x12xf32>
    %51 = tpu.matmul %48, %50, %cst_34 {dimension_numbers = #tpu.dot_dimension_numbers<[1], [0], [0], [1], [0, 0, 1, 1], [], []>} : vector<224x12xf32>, vector<12x12xf32>, vector<224x12xf32> -> vector<224x12xf32>
    %52 = arith.addf %47, %51 : vector<224x12xf32>
    %53 = vector.extract_strided_slice %11 {offsets = [49, 0], sizes = [224, 12], strides = [1, 1]} : vector<288x12xf32> to vector<224x12xf32>
    %c8 = arith.constant 8 : index
    %c0_35 = arith.constant 0 : index
    %c0_36 = arith.constant 0 : index
    %54 = vector.load %arg5[%c8, %c0_35, %c0_36] : memref<9x12x12xf32, #tpu.memory_space<vmem>>, vector<1x12x12xf32>
    %55 = vector.shape_cast %54 : vector<1x12x12xf32> to vector<12x12xf32>
    %cst_37 = arith.constant dense<0.000000e+00> : vector<224x12xf32>
    %56 = tpu.matmul %53, %55, %cst_37 {dimension_numbers = #tpu.dot_dimension_numbers<[1], [0], [0], [1], [0, 0, 1, 1], [], []>} : vector<224x12xf32>, vector<12x12xf32>, vector<224x12xf32> -> vector<224x12xf32>
    %57 = arith.addf %52, %56 : vector<224x12xf32>
    %c0_38 = arith.constant 0 : index
    %c0_39 = arith.constant 0 : index
    %58 = vector.load %arg6[%c0_38, %c0_39] : memref<1x12xf32, #tpu.memory_space<vmem>>, vector<1x12xf32>
    %59 = vector.broadcast %58 : vector<1x12xf32> to vector<224x12xf32>
    %60 = arith.addf %57, %59 : vector<224x12xf32>
    %cst_40 = arith.constant 0.000000e+00 : f32
    %61 = vector.broadcast %cst_40 : f32 to vector<224x12xf32>
    %62 = arith.maximumf %60, %61 : vector<224x12xf32>
    %c0_41 = arith.constant 0 : index
    %c0_42 = arith.constant 0 : index
    %63 = vector.load %arg7[%c0_41, %c0_42] : memref<12x48xf32, #tpu.memory_space<vmem>>, vector<12x48xf32>
    %cst_43 = arith.constant dense<0.000000e+00> : vector<224x48xf32>
    %64 = tpu.matmul %62, %63, %cst_43 {dimension_numbers = #tpu.dot_dimension_numbers<[1], [0], [0], [1], [0, 0, 1, 1], [], []>} : vector<224x12xf32>, vector<12x48xf32>, vector<224x48xf32> -> vector<224x48xf32>
    %c0_44 = arith.constant 0 : index
    %c0_45 = arith.constant 0 : index
    %65 = vector.load %arg8[%c0_44, %c0_45] : memref<1x48xf32, #tpu.memory_space<vmem>>, vector<1x48xf32>
    %66 = vector.broadcast %65 : vector<1x48xf32> to vector<224x48xf32>
    %67 = arith.addf %64, %66 : vector<224x48xf32>
    %68 = vector.extract_strided_slice %1 {offsets = [32, 0], sizes = [224, 48], strides = [1, 1]} : vector<288x48xf32> to vector<224x48xf32>
    %69 = arith.addf %67, %68 : vector<224x48xf32>
    %cst_46 = arith.constant 0.000000e+00 : f32
    %70 = vector.broadcast %cst_46 : f32 to vector<224x48xf32>
    %71 = arith.maximumf %69, %70 : vector<224x48xf32>
    %c0_47 = arith.constant 0 : index
    %c0_48 = arith.constant 0 : index
    %c0_49 = arith.constant 0 : index
    %72 = vector.load %arg9[%c0_47, %c0_48, %c0_49] : memref<1x224x48xf32, #tpu.memory_space<vmem>>, vector<1x224x48xf32>
    %73 = vector.shape_cast %72 : vector<1x224x48xf32> to vector<224x48xf32>
    %74 = vector.shape_cast %71 : vector<224x48xf32> to vector<1x224x48xf32>
    tpu.vector_store %arg9[%c0_47, %c0_48, %c0_49], %74 {strides = array<i32>} : memref<1x224x48xf32, #tpu.memory_space<vmem>>, vector<1x224x48xf32>,
    return
  }
  func.func @transform_0(%arg0: i32) -> (i32, i32, i32) {
    %c0_i32 = arith.constant 0 : i32
    %c0_i32_0 = arith.constant 0 : i32
    %c0_i32_1 = arith.constant 0 : i32
    return %arg0, %c0_i32, %c0_i32_0 : i32, i32, i32
  }
  func.func @transform_1(%arg0: i32) -> (i32, i32) {
    %c0_i32 = arith.constant 0 : i32
    %c0_i32_0 = arith.constant 0 : i32
    %c0_i32_1 = arith.constant 0 : i32
    return %c0_i32, %c0_i32_0 : i32, i32
  }
  func.func @transform_2(%arg0: i32) -> (i32, i32) {
    %c0_i32 = arith.constant 0 : i32
    %c0_i32_0 = arith.constant 0 : i32
    %c0_i32_1 = arith.constant 0 : i32
    return %c0_i32, %c0_i32_0 : i32, i32
  }
  func.func @transform_3(%arg0: i32) -> (i32, i32) {
    %c0_i32 = arith.constant 0 : i32
    %c0_i32_0 = arith.constant 0 : i32
    %c0_i32_1 = arith.constant 0 : i32
    return %c0_i32, %c0_i32_0 : i32, i32
  }
  func.func @transform_4(%arg0: i32) -> (i32, i32, i32) {
    %c0_i32 = arith.constant 0 : i32
    %c0_i32_0 = arith.constant 0 : i32
    %c0_i32_1 = arith.constant 0 : i32
    %c0_i32_2 = arith.constant 0 : i32
    return %c0_i32, %c0_i32_0, %c0_i32_1 : i32, i32, i32
  }
  func.func @transform_5(%arg0: i32) -> (i32, i32) {
    %c0_i32 = arith.constant 0 : i32
    %c0_i32_0 = arith.constant 0 : i32
    %c0_i32_1 = arith.constant 0 : i32
    return %c0_i32, %c0_i32_0 : i32, i32
  }
  func.func @transform_6(%arg0: i32) -> (i32, i32) {
    %c0_i32 = arith.constant 0 : i32
    %c0_i32_0 = arith.constant 0 : i32
    %c0_i32_1 = arith.constant 0 : i32
    return %c0_i32, %c0_i32_0 : i32, i32
  }
  func.func @transform_7(%arg0: i32) -> (i32, i32) {
    %c0_i32 = arith.constant 0 : i32
    %c0_i32_0 = arith.constant 0 : i32
    %c0_i32_1 = arith.constant 0 : i32
    return %c0_i32, %c0_i32_0 : i32, i32
  }
  func.func @transform_8(%arg0: i32) -> (i32, i32, i32) {
    %c0_i32 = arith.constant 0 : i32
    %c0_i32_0 = arith.constant 0 : i32
    %c0_i32_1 = arith.constant 0 : i32
    return %arg0, %c0_i32, %c0_i32_0 : i32, i32, i32
  }
}

</mosaic_0001>

<bundles_post_ra>
// kernel: tpu_custom_call.1
= control target key start
LH: loop header
LB: loop body
LE: loop exit
PB: predicated region body
PF: predicated region fallthrough
CT: control target
= control target key end

     0   :  { %s5553_s27 = smov 0   ;;  %s7090_s0 = inlined_call_operand.vmem [shape: f32[2,288,48], index: 0, kind: input, shape index: {}]   ;;  %s7091_s1 = inlined_call_operand.vmem [shape: f32[288,1], index: 1, kind: input, shape index: {}]   ;;  %s7092_s2 = inlined_call_operand.vmem [shape: f32[48,12], index: 2, kind: input, shape index: {}]   ;;  %s7093_s3 = inlined_call_operand.vmem [shape: f32[1,12], index: 3, kind: input, shape index: {}]   ;;  %s7094_s4 = inlined_call_operand.vmem [shape: f32[9,12,12], index: 4, kind: input, shape index: {}]   ;;  %s7095_s5 = inlined_call_operand.vmem [shape: f32[1,12], index: 5, kind: input, shape index: {}]   ;;  %s7096_s6 = inlined_call_operand.vmem [shape: f32[12,48], index: 6, kind: input, shape index: {}]   ;;  %s7097_s7 = inlined_call_operand.vmem [shape: f32[1,48], index: 7, kind: input, shape index: {}]   ;;  %s7098_s8 = inlined_call_operand.vmem [shape: f32[2,224,48], index: 8, kind: output, shape index: {}]  }
   0x1 LB: > { %s3936_s28 = sadd.s32 4294967295, %s5504_s27   ;;  %p3940_p0 = scmp.ge.s32.totalorder %s5504_s27, 1  ;;  %s5504_s27 = sphi %s5553_s27, %s18_s27  }
   0x2   : > { %p262_p1 = scmp.lt.s32.totalorder %s5504_s27, 3 }
   0x4   : > { %p263_p2 = pnand %p3940_p0, %p262_p1 }
   0x6   : > { %266 = sbr.rel (%p263_p2) target bundleno = 1031 (0x407), region = 52 }
   0xd   : > { %v376_v0 = vld [vmem:[%s7092_s2] sm:$0xff]  ;;  %v377_v1 = vld [vmem:[%s7092_s2 + $0x8] sm:$0xff]  ;;  %v378_v2 = vld [vmem:[%s7092_s2 + $0x10] sm:$0xff]  ;;  %p296_p3 = scmp.lt.s32.totalorder %s3936_s28, 1  ;;  %v5506_v5 = vmov 0   ;;  %vm389_vm0 = vcmask 392192  }
   0xe   : > { %v5158_v3 = vpack.c.bf16 %v377_v1, %v376_v0  ;;  %v379_v4 = vld [vmem:[%s7092_s2 + $0x18] sm:$0xff]  ;;  %5469 = vset.pattern.permute.xlu1 %v5506_v5  ;;  %5468 = vset.pattern.permute.xlu0 %v5506_v5  ;;  %v380_v7 = vld [vmem:[%s7092_s2 + $0x20] sm:$0xff]  ;;  %v381_v8 = vld [vmem:[%s7092_s2 + $0x28] sm:$0xff]  ;;  %vm1069_vm1 = vcmask 1043456   ;;  %vm5507_vm2 = vmmov 1   ;;  %vm984_vm4 = vcmask 97280  }
   0xf   : > { %v5162_v6 = vpack.c.bf16 %v379_v4, %v378_v2  ;;  %s7211_s28 = smov (!%p296_p3, %s3936_s28), 1  ;;  %v354_v9 = vld [vmem:[%s7091_s1 + $0x68] sm:$0xff]  ;;  %v352_v10 = vld [vmem:[%s7091_s1 + $0x58] sm:$0xff]  ;;  %v355_v11 = vld [vmem:[%s7091_s1 + $0x70] sm:$0xff]  ;;  %v5166_v12 = vpack.c.bf16 %v381_v8, %v380_v7  ;;  %vm1279_vm5 = vcmask 1040384   ;;  %vm1605_vm6 = vcmask 1046528  }
  0x10   : > { %5159 = vmatprep.subr.bf16.mxu0 %v5158_v3  ;;  %837 = vperm.xlu1 %5469, %v354_v9   ;;  %s5456_s23 = smul.u32 288, %s7211_s28  ;;  %v353_v13 = vld [vmem:[%s7091_s1 + $0x60] sm:$0xff]  ;;  %v356_v16 = vld [vmem:[%s7091_s1 + $0x78] sm:$0xff]  ;;  %v359_v18 = vld [vmem:[%s7091_s1 + $0x90] sm:$0xff] }
  0x11   : > { %5161 = vmatpush3.bf16.msra.mxu0 %v5158_v3  ;;  %827 = vperm.xlu0 %5468, %v352_v10   ;;  %v357_v15 = vld [vmem:[%s7091_s1 + $0x80] sm:$0xff]  ;;  %v358_v20 = vld [vmem:[%s7091_s1 + $0x88] sm:$0xff]  ;;  %v360_v24 = vld [vmem:[%s7091_s1 + $0x98] sm:$0xff]  ;;  %s5457_s22 = smul.u32 224, %s7211_s28 }
  0x12   : > { %5163 = vmatprep.subr.bf16.mxu0 %v5162_v6  ;;  %s5594_s30 = scalar_lea.vmem %s7090_s0, %s5456_s23  ;;  %v361_v22 = vld [vmem:[%s7091_s1 + $0xa0] sm:$0xff]  ;;  %v363_v26 = vld [vmem:[%s7091_s1 + $0xb0] sm:$0xff]  ;;  %v362_v28 = vld [vmem:[%s7091_s1 + $0xa8] sm:$0xff] }
  0x13   : > { %v306_v14 = vld [vmem:[%s5594_s30] sm:$0xff]  ;;  %v307_v17 = vld [vmem:[%s5594_s30 + $0x8] sm:$0xff]  ;;  %v308_v19 = vld [vmem:[%s5594_s30 + $0x10] sm:$0xff]  ;;  %s6976_s25 = scalar_lea.vmem %s7098_s8, %s5457_s22 }
  0x14   : > { %842 = vperm.xlu1 %5469, %v355_v11   ;;  %4644 = vmatprep.mubr.msk.f32.mxu0 %vm389_vm0, %v306_v14  ;;  %v309_v21 = vld [vmem:[%s5594_s30 + $0x18] sm:$0xff]  ;;  %v310_v23 = vld [vmem:[%s5594_s30 + $0x20] sm:$0xff]  ;;  %v311_v25 = vld [vmem:[%s5594_s30 + $0x28] sm:$0xff] }
  0x15   : > { %5165 = vmatpush3.bf16.msra.mxu0 %v5162_v6  ;;  %832 = vperm.xlu0 %5468, %v353_v13   ;;  %v312_v27 = vld [vmem:[%s5594_s30 + $0x30] sm:$0xff]  ;;  %v313_v29 = vld [vmem:[%s5594_s30 + $0x38] sm:$0xff]  ;;  %v365_v30 = vld [vmem:[%s7091_s1 + $0xc0] sm:$0xff] }
  0x16   : > { %5167 = vmatprep.subr.bf16.mxu0 %v5166_v12  ;;  %v314_v31 = vld [vmem:[%s5594_s30 + $0x40] sm:$0xff]  ;;  %v364_v32 = vld [vmem:[%s7091_s1 + $0xb8] sm:$0xff]  ;;  %v315_v33 = vld [vmem:[%s5594_s30 + $0x48] sm:$0xff] }
  0x17   : > { %v367_v34 = vld [vmem:[%s7091_s1 + $0xd0] sm:$0xff]  ;;  %v366_v36 = vld [vmem:[%s7091_s1 + $0xc8] sm:$0xff]  ;;  %v317_v37 = vld [vmem:[%s5594_s30 + $0x58] sm:$0xff] }
  0x18   : > { %852 = vperm.xlu1 %5469, %v357_v15   ;;  %v316_v35 = vld [vmem:[%s5594_s30 + $0x50] sm:$0xff]  ;;  %v369_v38 = vld [vmem:[%s7091_s1 + $0xe0] sm:$0xff]  ;;  %v368_v40 = vld [vmem:[%s7091_s1 + $0xd8] sm:$0xff] }
  0x19   : > { %5169 = vmatpush3.bf16.msra.mxu0 %v5166_v12  ;;  %847 = vperm.xlu0 %5468, %v356_v16   ;;  %v318_v39 = vld [vmem:[%s5594_s30 + $0x60] sm:$0xff]  ;;  %v319_v41 = vld [vmem:[%s5594_s30 + $0x68] sm:$0xff]  ;;  %v371_v42 = vld [vmem:[%s7091_s1 + $0xf0] sm:$0xff] }
  0x1a   : > { %v320_v43 = vld [vmem:[%s5594_s30 + $0x70] sm:$0xff]  ;;  %v370_v44 = vld [vmem:[%s7091_s1 + $0xe8] sm:$0xff]  ;;  %v321_v45 = vld [vmem:[%s5594_s30 + $0x78] sm:$0xff] }
  0x1b   : > { %v345_v46 = vld [vmem:[%s7091_s1 + $0x20] sm:$0xff]  ;;  %v372_v48 = vld [vmem:[%s7091_s1 + $0xf8] sm:$0xff]  ;;  %v323_v49 = vld [vmem:[%s5594_s30 + $0x88] sm:$0xff] }
  0x1c   : > { %4645 = vmatmul.mubr.msk.f32.vlgmr.msra.gmra.mrb[0].mxu0 %vm389_vm0, %v307_v17  ;;  %862 = vperm.xlu1 %5469, %v359_v18   ;;  %v322_v47 = vld [vmem:[%s5594_s30 + $0x80] sm:$0xff]  ;;  %v347_v50 = vld [vmem:[%s7091_s1 + $0x30] sm:$0xff]  ;;  %v346_v52 = vld [vmem:[%s7091_s1 + $0x28] sm:$0xff] }
  0x1d   : > { %4647 = vmatprep.mubr.msk.f32.mxu0 %vm389_vm0, %v308_v19  ;;  %857 = vperm.xlu0 %5468, %v358_v20   ;;  %v324_v51 = vld [vmem:[%s5594_s30 + $0x90] sm:$0xff]  ;;  %v325_v53 = vld [vmem:[%s5594_s30 + $0x98] sm:$0xff]  ;;  %v349_v54 = vld [vmem:[%s7091_s1 + $0x40] sm:$0xff] }
  0x1e   : > { %v326_v55 = vld [vmem:[%s5594_s30 + $0xa0] sm:$0xff]  ;;  %v348_v56 = vld [vmem:[%s7091_s1 + $0x38] sm:$0xff]  ;;  %v327_v57 = vld [vmem:[%s5594_s30 + $0xa8] sm:$0xff] }
  0x1f   : > { %v351_v58 = vld [vmem:[%s7091_s1 + $0x50] sm:$0xff]  ;;  %v350_v60 = vld [vmem:[%s7091_s1 + $0x48] sm:$0xff]  ;;  %v329_v61 = vld [vmem:[%s5594_s30 + $0xb8] sm:$0xff] }
  0x20   : > { %4648 = vmatmul.mubr.msk.f32.gmra.mrb[2].mxu0 %vm389_vm0, %v309_v21  ;;  %872 = vperm.xlu1 %5469, %v361_v22   ;;  %v328_v59 = vld [vmem:[%s5594_s30 + $0xb0] sm:$0xff]  ;;  %v344_v62 = vld [vmem:[%s7091_s1 + $0x18] sm:$0xff]  ;;  %v330_v63 = vld [vmem:[%s5594_s30 + $0xc0] sm:$0xff] }
  0x21   : > { %4650 = vmatprep.mubr.msk.f32.mxu0 %vm389_vm0, %v310_v23  ;;  %867 = vperm.xlu0 %5468, %v360_v24   ;;  %v343_v0 = vld [vmem:[%s7091_s1 + $0x10] sm:$0xff]  ;;  %v331_v1 = vld [vmem:[%s5594_s30 + $0xc8] sm:$0xff]  ;;  %v373_v4 = vld [vmem:[%s7091_s1 + $0x100] sm:$0xff] }
  0x22   : > { %v342_v2 = vld [vmem:[%s7091_s1 + $0x8] sm:$0xff]  ;;  %v332_v3 = vld [vmem:[%s5594_s30 + $0xd0] sm:$0xff]  ;;  %v333_v5 = vld [vmem:[%s5594_s30 + $0xd8] sm:$0xff] }
  0x23   : > { %v375_v6 = vld [vmem:[%s7091_s1 + $0x110] sm:$0xff]  ;;  %v334_v7 = vld [vmem:[%s5594_s30 + $0xe0] sm:$0xff]  ;;  %v374_v8 = vld [vmem:[%s7091_s1 + $0x108] sm:$0xff] }
  0x24   : > { %4651 = vmatmul.mubr.msk.f32.gmra.mrb[4].mxu0 %vm389_vm0, %v311_v25  ;;  %882 = vperm.xlu1 %5469, %v363_v26   ;;  %v335_v9 = vld [vmem:[%s5594_s30 + $0xe8] sm:$0xff]  ;;  %v336_v10 = vld [vmem:[%s5594_s30 + $0xf0] sm:$0xff]  ;;  %v337_v11 = vld [vmem:[%s5594_s30 + $0xf8] sm:$0xff] }
  0x25   : > { %4653 = vmatprep.mubr.msk.f32.mxu0 %vm389_vm0, %v312_v27  ;;  %877 = vperm.xlu0 %5468, %v362_v28   ;;  %v338_v12 = vld [vmem:[%s5594_s30 + $0x100] sm:$0xff]  ;;  %v339_v13 = vld [vmem:[%s5594_s30 + $0x108] sm:$0xff]  ;;  %v340_v14 = vld [vmem:[%s5594_s30 + $0x110] sm:$0xff] }
  0x26   : > { %v341_v15 = vld [vmem:[%s5594_s30 + $0x118] sm:$0xff]  ;;  %v3980_v16 = vld [vmem:[%s7094_s4 + $0x10] sm:$0xff]  ;;  %vm5767_vm3 = vmpackc.low %vm1069_vm1, %vm5507_vm2 }
  0x27   : > { %v3981_v17 = vld [vmem:[%s7094_s4 + $0x18] sm:$0xf]  ;;  %v4071_v20 = vld [vmem:[%s7094_s4 + $0x30] sm:$0xff]  ;;  %v4102_v23 = vld [vmem:[%s7094_s4 + $0x40] sm:$0xff] }
  0x28   : > { %4654 = vmatmul.mubr.msk.f32.gmra.mrb[6].mxu0 %vm389_vm0, %v313_v29  ;;  %892 = vperm.xlu1 %5469, %v365_v30   ;;  %v5170_v18 = vpack.c.bf16 %v3981_v17, %v3980_v16  ;;  %v4072_v21 = vld [vmem:[%s7094_s4 + $0x38] sm:$0xf]  ;;  %v4103_v24 = vld [vmem:[%s7094_s4 + $0x48] sm:$0xf] }
  0x29   : > { %4656 = vmatprep.mubr.msk.f32.mxu0 %vm389_vm0, %v314_v31  ;;  %887 = vperm.xlu0 %5468, %v364_v32   ;;  %v5781_v22 = vpack.c.bf16 %v4072_v21, %v4071_v20  ;;  %v5795_v25 = vpack.c.bf16 %v4103_v24, %v4102_v23  ;;  %v979_v32 = vld [vmem:[%s7094_s4] sm:$0xff] }
  0x2a   : > { %5172 = vmatprep.subr.msk.bf16.mxu0 %vm5767_vm3, %v5170_v18 }
  0x2b   : > { %5175 = vmatpush3.bf16.msk.msra.mxu0 %vm5767_vm3, %v5170_v18  ;;  %5230 = vmatprep.subr.msk.bf16.mxu1 %vm5767_vm3, %v5781_v22 }
  0x2c   : > { %4657 = vmatmul.mubr.msk.f32.gmra.mrb[8].mxu0 %vm389_vm0, %v315_v33  ;;  %902 = vperm.xlu1 %5469, %v367_v34   ;;  %v980_v33 = vld [vmem:[%s7094_s4 + $0x8] sm:$0xf] }
  0x2d   : > { %4659 = vmatprep.mubr.msk.f32.mxu0 %vm389_vm0, %v316_v35  ;;  %897 = vperm.xlu0 %5468, %v366_v36   ;;  %v5820_v35 = vpack.c.bf16 %v980_v33, %v979_v32 }
  0x2e   : > { %5231 = vmatpush3.bf16.msk.msra.mxu1 %vm5767_vm3, %v5781_v22 }
  0x2f   : > { %5196 = vmatprep.subr.msk.bf16.mxu1 %vm5767_vm3, %v5795_v25  ;;  %5178 = vmatprep.subr.msk.bf16.mxu0 %vm5767_vm3, %v5820_v35 }
  0x30   : > { %4660 = vmatmul.mubr.msk.f32.gmra.mrb[10].mxu0 %vm389_vm0, %v317_v37  ;;  %912 = vperm.xlu1 %5469, %v369_v38  }
  0x31   : > { %4662 = vmatprep.mubr.msk.f32.mxu0 %vm389_vm0, %v318_v39  ;;  %907 = vperm.xlu0 %5468, %v368_v40  }
  0x34   : > { %4663 = vmatmul.mubr.msk.f32.gmra.mrb[12].mxu0 %vm389_vm0, %v319_v41  ;;  %922 = vperm.xlu1 %5469, %v371_v42  }
  0x35   : > { %4665 = vmatprep.mubr.msk.f32.mxu0 %vm389_vm0, %v320_v43  ;;  %917 = vperm.xlu0 %5468, %v370_v44  }
  0x38   : > { %4666 = vmatmul.mubr.msk.f32.gmra.mrb[14].mxu0 %vm389_vm0, %v321_v45  ;;  %792 = vperm.xlu1 %5469, %v345_v46  }
  0x39   : > { %4668 = vmatprep.mubr.msk.f32.mxu0 %vm389_vm0, %v322_v47  ;;  %927 = vperm.xlu0 %5468, %v372_v48  }
  0x3c   : > { %4669 = vmatmul.mubr.msk.f32.gmra.mrb[16].mxu0 %vm389_vm0, %v323_v49  ;;  %802 = vperm.xlu1 %5469, %v347_v50  }
  0x3d   : > { %4671 = vmatprep.mubr.msk.f32.mxu0 %vm389_vm0, %v324_v51  ;;  %797 = vperm.xlu0 %5468, %v346_v52  }
  0x40   : > { %4672 = vmatmul.mubr.msk.f32.gmra.mrb[18].mxu0 %vm389_vm0, %v325_v53  ;;  %812 = vperm.xlu1 %5469, %v349_v54  }
  0x41   : > { %4674 = vmatprep.mubr.msk.f32.mxu0 %vm389_vm0, %v326_v55  ;;  %807 = vperm.xlu0 %5468, %v348_v56   ;;  %v5864_v56 = vld [vmem:[%s7093_s3] ss:$0 sm:$0xff] }
  0x44   : > { %4675 = vmatmul.mubr.msk.f32.gmra.mrb[20].mxu0 %vm389_vm0, %v327_v57  ;;  %822 = vperm.xlu1 %5469, %v351_v58  }
  0x45   : > { %4677 = vmatprep.mubr.msk.f32.mxu0 %vm389_vm0, %v328_v59  ;;  %817 = vperm.xlu0 %5468, %v350_v60  }
  0x48   : > { %4678 = vmatmul.mubr.msk.f32.gmra.mrb[22].mxu0 %vm389_vm0, %v329_v61  ;;  %787 = vperm.xlu1 %5469, %v344_v62  }
  0x49   : > { %4680 = vmatprep.mubr.msk.f32.mxu0 %vm389_vm0, %v330_v63  ;;  %782 = vperm.xlu0 %5468, %v343_v0  }
  0x4c   : > { %4681 = vmatmul.mubr.msk.f32.gmra.mrb[24].mxu0 %vm389_vm0, %v331_v1  ;;  %777 = vperm.xlu1 %5469, %v342_v2  }
  0x4d   : > { %4683 = vmatprep.mubr.msk.f32.mxu0 %vm389_vm0, %v332_v3  ;;  %932 = vperm.xlu0 %5468, %v373_v4  }
  0x50   : > { %4684 = vmatmul.mubr.msk.f32.gmra.mrb[26].mxu0 %vm389_vm0, %v333_v5  ;;  %942 = vperm.xlu1 %5469, %v375_v6  }
  0x51   : > { %4686 = vmatprep.mubr.msk.f32.mxu0 %vm389_vm0, %v334_v7  ;;  %937 = vperm.xlu0 %5468, %v374_v8  }
  0x54   : > { %4687 = vmatmul.mubr.msk.f32.gmra.mrb[28].mxu0 %vm389_vm0, %v335_v9  ;;  %v4040_v9 = vld [vmem:[%s7094_s4 + $0x20] sm:$0xff] }
  0x55   : > { %4689 = vmatprep.mubr.msk.f32.mxu0 %vm389_vm0, %v336_v10  ;;  %v4041_v10 = vld [vmem:[%s7094_s4 + $0x28] sm:$0xf] }
  0x56   : > { %v5879_v20 = vpack.c.bf16 %v4041_v10, %v4040_v9 }
  0x58   : > { %4690 = vmatmul.mubr.msk.f32.gmra.mrb[30].mxu0 %vm389_vm0, %v337_v11 }
  0x59   : > { %4692 = vmatprep.mubr.msk.f32.mxu0 %vm389_vm0, %v338_v12 }
  0x5c   : > { %4693 = vmatmul.mubr.msk.f32.gmra.mrb[32].mxu0 %vm389_vm0, %v339_v13 }
  0x5d   : > { %4695 = vmatprep.mubr.msk.f32.mxu0 %vm389_vm0, %v340_v14 }
  0x60   : > { %4696 = vmatmul.mubr.msk.f32.gmra.mrb[34].mxu0 %vm389_vm0, %v341_v15 }
  0x8f   : > { %v5800_v26 = vpop.permute.xlu1 %837 }
  0x90   : > { %v5804_v28 = vpop.permute.xlu0 %827 }
  0x93   : > { %v5802_v27 = vpop.permute.xlu1 %842 }
  0x94   : > { %v5808_v30 = vpop.permute.xlu0 %832 }
  0x97   : > { %v5806_v29 = vpop.permute.xlu1 %852 }
  0x98   : > { %v5818_v34 = vpop.permute.xlu0 %847 }
  0x9b   : > { %v5810_v31 = vpop.permute.xlu1 %862 }
  0x9c   : > { %v5827_v37 = vpop.permute.xlu0 %857 }
  0x9f   : > { %v5825_v36 = vpop.permute.xlu1 %872 }
  0xa0   : > { %v5831_v39 = vpop.permute.xlu0 %867 }
  0xa3   : > { %v5829_v38 = vpop.permute.xlu1 %882 }
  0xa4   : > { %v5835_v41 = vpop.permute.xlu0 %877 }
  0xa7   : > { %v5833_v40 = vpop.permute.xlu1 %892 }
  0xa8   : > { %v5839_v43 = vpop.permute.xlu0 %887 }
  0xab   : > { %v5837_v42 = vpop.permute.xlu1 %902 }
  0xac   : > { %v5843_v45 = vpop.permute.xlu0 %897 }
  0xaf   : > { %v5841_v44 = vpop.permute.xlu1 %912 }
  0xb0   : > { %v5847_v47 = vpop.permute.xlu0 %907 }
  0xb3   : > { %v5845_v46 = vpop.permute.xlu1 %922 }
  0xb4   : > { %v5849_v49 = vpop.permute.xlu0 %917 }
  0xb7   : > { %v793_v48 = vpop.permute.xlu1 %792 }
  0xb8   : > { %v5853_v51 = vpop.permute.xlu0 %927 }
  0xbb   : > { %v5851_v50 = vpop.permute.xlu1 %802 }
  0xbc   : > { %v798_v53 = vpop.permute.xlu0 %797 }
  0xbf   : > { %v5855_v52 = vpop.permute.xlu1 %812 }
  0xc0   : > { %v5859_v55 = vpop.permute.xlu0 %807 }
  0xc3   : > { %v5857_v54 = vpop.permute.xlu1 %822 }
  0xc4   : > { %v5867_v61 = vpop.permute.xlu0 %817 }
  0xc7   : > { %v788_v57 = vpop.permute.xlu1 %787 }
  0xc8   : > { %v783_v5 = vpop.permute.xlu0 %782 }
  0xcb   : > { %v778_v0 = vpop.permute.xlu1 %777 }
  0xef   : > { %v4646_v58 = vpop.f32.mrb[0].mxu0 }
  0xf0   : > { %v569_v59 = vadd.f32 %v4646_v58, %v5864_v56  ;;  %v564_v60 = vpop.f32.mrb[1].mxu0 }
  0xf2   : > { %v741_v62 = vmax.f32 %v569_v59, 0.0 }
  0xf3   : > { %v4649_v63 = vpop.f32.mrb[2].mxu0 }
  0xf4   : > { %v579_v1 = vadd.f32 %v4649_v63, %v5864_v56  ;;  %v573_v2 = vpop.f32.mrb[3].mxu0  ;;  %v945_v6 = vmul.f32 %v778_v0, %v741_v62 }
  0xf5   : > { %v574_v3 = vadd.f32 %v5864_v56, %v573_v2 }
  0xf6   : > { %v743_v4 = vmax.f32 %v579_v1, 0.0  ;;  %v1280_v21 = vrot.slane %v945_v6, 7 }
  0xf7   : > { %v742_v7 = vmax.f32 %v574_v3, 0.0  ;;  %v4652_v8 = vpop.f32.mrb[4].mxu0 }
  0xf8   : > { %v947_v11 = vmul.f32 %v788_v57, %v743_v4  ;;  %v589_v12 = vadd.f32 %v4652_v8, %v5864_v56  ;;  %v583_v13 = vpop.f32.mrb[5].mxu0 }
  0xf9   : > { %v946_v14 = vmul.f32 %v783_v5, %v742_v7  ;;  %v584_v15 = vadd.f32 %v5864_v56, %v583_v13 }
  0xfa   : > { %v1283_v16 = vrot.slane %v947_v11, 7  ;;  %v1607_v17 = vrot.slane %v947_v11, 1  ;;  %v745_v18 = vmax.f32 %v589_v12, 0.0 }
  0xfb   : > { %v1281_v23 = vrot.slane %v946_v14, 7  ;;  %v1606_v24 = vrot.slane %v946_v14, 1  ;;  %v744_v32 = vmax.f32 %v584_v15, 0.0  ;;  %v4655_v33 = vpop.f32.mrb[6].mxu0  ;;  %4702 = vmatprep.mubr.msk.f32.mxu0 %vm984_vm4, %v946_v14 }
  0xfc   : > { %v5882_v57 = vmul.f32 %v798_v53, %v745_v18  ;;  %v599_v58 = vadd.f32 %v4655_v33, %v5864_v56  ;;  %v593_v59 = vpop.f32.mrb[7].mxu0  ;;  %4703 = vmatmul.mubr.msk.f32.vlgmr.msra.gmra.mrb[36].mxu0 %vm984_vm4, %v947_v11 }
  0xfd   : > { %v5886_v60 = vmul.f32 %v793_v48, %v744_v32  ;;  %v594_v62 = vadd.f32 %v5864_v56, %v593_v59  ;;  %5181 = vmatpush3.bf16.msk.msra.mxu0 %vm5767_vm3, %v5820_v35  ;;  %v5893_v63 = vsel %vm1279_vm5, %v1280_v21, %v1281_v23  ;;  %v5896_v0 = vsel %vm1279_vm5, %v1281_v23, %v1283_v16 }
  0xfe   : > { %v747_v53 = vmax.f32 %v599_v58, 0.0  ;;  %v7101_v1 = vrot.slane %v5882_v57, 7  ;;  %5184 = vmatprep.subr.msk.bf16.mxu0 %vm5767_vm3, %v5879_v20  ;;  %v5903_v48 = vsel %vm1605_vm6, %v1606_v24, %v1607_v17  ;;  %v7099_v2 = vrot.slane %v5882_v57, 1 }
  0xff   : > { %7138 = vst [vmem:[#allocation2_spill] sm:$0xff] %v5903_v48  ;;  %v1609_v35 = vrot.slane %v5886_v60, 1  ;;  %v746_v3 = vmax.f32 %v594_v62, 0.0  ;;  %v4658_v4 = vpop.f32.mrb[8].mxu0  ;;  %4705 = vmatprep.mubr.msk.f32.mxu0 %vm984_vm4, %v5886_v60  ;;  %v1285_v5 = vrot.slane %v5886_v60, 7 }
 0x100   : > { %v609_v6 = vadd.f32 %v4658_v4, %v5864_v56  ;;  %v603_v7 = vpop.f32.mrb[9].mxu0  ;;  %4706 = vmatmul.mubr.msk.f32.gmra.mrb[38].mxu0 %vm984_vm4, %v5882_v57  ;;  %v5926_v12 = vmul.f32 %v5859_v55, %v747_v53 }
 0x101   : > { %v5914_v8 = vmul.f32 %v5851_v50, %v746_v3  ;;  %v604_v9 = vadd.f32 %v5864_v56, %v603_v7  ;;  %v5918_v10 = vsel %vm1279_vm5, %v1283_v16, %v1285_v5  ;;  %v5923_v11 = vsel %vm1279_vm5, %v1285_v5, %v7101_v1  ;;  %v4133_v7 = vld [vmem:[%s7094_s4 + $0x50] sm:$0xff] }
 0x102   : > { %7140 = vst [vmem:[#allocation4_spill] sm:$0xff] %v5926_v12  ;;  %v749_v13 = vmax.f32 %v609_v6, 0.0  ;;  %v5929_v14 = vsel %vm1605_vm6, %v1607_v17, %v1609_v35  ;;  %v5934_v50 = vsel %vm1605_vm6, %v1609_v35, %v7099_v2 }
 0x103   : > { %7139 = vst [vmem:[#allocation3_spill] sm:$0xff] %v5914_v8  ;;  %7141 = vst [vmem:[#allocation5_spill] sm:$0xff] %v5929_v14  ;;  %v748_v15 = vmax.f32 %v604_v9, 0.0  ;;  %v4661_v16 = vpop.f32.mrb[10].mxu0  ;;  %4708 = vmatprep.mubr.msk.f32.mxu0 %vm984_vm4, %v5914_v8 }
 0x104   : > { %7142 = vst [vmem:[#allocation6_spill] sm:$0xff] %v5934_v50  ;;  %v619_v18 = vadd.f32 %v4661_v16, %v5864_v56  ;;  %v613_v21 = vpop.f32.mrb[11].mxu0  ;;  %4709 = vmatmul.mubr.msk.f32.gmra.mrb[40].mxu0 %vm984_vm4, %v5926_v12  ;;  %v5946_v23 = vmul.f32 %v5867_v61, %v749_v13 }
 0x105   : > { %v5942_v55 = vmul.f32 %v5855_v52, %v748_v15  ;;  %v614_v17 = vadd.f32 %v5864_v56, %v613_v21 }
 0x106   : > { %v751_v24 = vmax.f32 %v619_v18, 0.0 }
 0x107   : > { %7143 = vst [vmem:[#allocation7_spill] sm:$0xff] %v5942_v55  ;;  %v750_v32 = vmax.f32 %v614_v17, 0.0  ;;  %v4664_v33 = vpop.f32.mrb[12].mxu0  ;;  %4711 = vmatprep.mubr.msk.f32.mxu0 %vm984_vm4, %v5942_v55 }
 0x108   : > { %v629_v58 = vadd.f32 %v4664_v33, %v5864_v56  ;;  %v623_v59 = vpop.f32.mrb[13].mxu0  ;;  %4712 = vmatmul.mubr.msk.f32.gmra.mrb[42].mxu0 %vm984_vm4, %v5946_v23  ;;  %v5958_v61 = vmul.f32 %v5804_v28, %v751_v24 }
 0x109   : > { %v5954_v52 = vmul.f32 %v5857_v54, %v750_v32  ;;  %v624_v62 = vadd.f32 %v5864_v56, %v623_v59 }
 0x10a   : > { %v753_v53 = vmax.f32 %v629_v58, 0.0 }
 0x10b   : > { %v752_v35 = vmax.f32 %v624_v62, 0.0  ;;  %v4667_v3 = vpop.f32.mrb[14].mxu0  ;;  %4714 = vmatprep.mubr.msk.f32.mxu0 %vm984_vm4, %v5954_v52 }
 0x10c   : > { %v5963_v4 = vmul.f32 %v5800_v26, %v753_v53  ;;  %v639_v5 = vadd.f32 %v4667_v3, %v5864_v56  ;;  %v633_v6 = vpop.f32.mrb[15].mxu0  ;;  %4715 = vmatmul.mubr.msk.f32.gmra.mrb[44].mxu0 %vm984_vm4, %v5958_v61  ;;  %v4134_v26 = vld [vmem:[%s7094_s4 + $0x58] sm:$0xf] }
 0x10d   : > { %v5969_v54 = vmul.f32 %v5808_v30, %v752_v35  ;;  %v634_v28 = vadd.f32 %v5864_v56, %v633_v6  ;;  %v7100_v30 = vrot.slane %v5958_v61, 7  ;;  %v5989_v32 = vpack.c.bf16 %v4134_v26, %v4133_v7 }
 0x10e   : > { %v755_v9 = vmax.f32 %v639_v5, 0.0  ;;  %v1303_v13 = vrot.slane %v5963_v4, 7 }
 0x10f   : > { %v754_v15 = vmax.f32 %v634_v28, 0.0  ;;  %v4670_v16 = vpop.f32.mrb[16].mxu0  ;;  %4717 = vmatprep.mubr.msk.f32.mxu0 %vm984_vm4, %v5969_v54  ;;  %v1301_v18 = vrot.slane %v5969_v54, 7 }
 0x110   : > { %v5984_v21 = vmul.f32 %v5818_v34, %v755_v9  ;;  %v649_v17 = vadd.f32 %v4670_v16, %v5864_v56  ;;  %v643_v24 = vpop.f32.mrb[17].mxu0  ;;  %4718 = vmatmul.mubr.msk.f32.gmra.mrb[46].mxu0 %vm984_vm4, %v5963_v4 }
 0x111   : > { %v5992_v33 = vmul.f32 %v5802_v27, %v754_v15  ;;  %v644_v58 = vadd.f32 %v5864_v56, %v643_v24  ;;  %v5998_v59 = vsel %vm1279_vm5, %v7100_v30, %v1301_v18  ;;  %v6001_v34 = vsel %vm1279_vm5, %v1301_v18, %v1303_v13 }
 0x112   : > { %v757_v62 = vmax.f32 %v649_v17, 0.0  ;;  %4852 = vmatprep.mubr.msk.f32.mxu1 %vm984_vm4, %v5998_v59  ;;  %v1307_v53 = vrot.slane %v5984_v21, 7 }
 0x113   : > { %v756_v35 = vmax.f32 %v644_v58, 0.0  ;;  %v4673_v3 = vpop.f32.mrb[18].mxu0  ;;  %4720 = vmatprep.mubr.msk.f32.mxu0 %vm984_vm4, %v5992_v33  ;;  %4853 = vmatmul.mubr.msk.f32.vlgmr.msra.gmra.mrb[0].mxu1 %vm984_vm4, %v6001_v34  ;;  %v1305_v27 = vrot.slane %v5992_v33, 7 }
 0x114   : > { %v6012_v5 = vmul.f32 %v5827_v37, %v757_v62  ;;  %v659_v6 = vadd.f32 %v4673_v3, %v5864_v56  ;;  %5199 = vmatpush3.bf16.msk.msra.mxu1 %vm5767_vm3, %v5795_v25  ;;  %v653_v28 = vpop.f32.mrb[19].mxu0  ;;  %4721 = vmatmul.mubr.msk.f32.gmra.mrb[48].mxu0 %vm984_vm4, %v5984_v21 }
 0x115   : > { %v6021_v7 = vmul.f32 %v5806_v29, %v756_v35  ;;  %v654_v26 = vadd.f32 %v5864_v56, %v653_v28  ;;  %v6025_v9 = vsel %vm1279_vm5, %v1303_v13, %v1305_v27  ;;  %v6028_v37 = vsel %vm1279_vm5, %v1305_v27, %v1307_v53  ;;  %5202 = vmatprep.subr.msk.bf16.mxu1 %vm5767_vm3, %v5989_v32 }
 0x116   : > { %v759_v25 = vmax.f32 %v659_v6, 0.0  ;;  %4855 = vmatprep.mubr.msk.f32.mxu1 %vm984_vm4, %v6025_v9  ;;  %v1311_v15 = vrot.slane %v6012_v5, 7 }
 0x117   : > { %v758_v29 = vmax.f32 %v654_v26, 0.0  ;;  %v4676_v16 = vpop.f32.mrb[20].mxu0  ;;  %4723 = vmatprep.mubr.msk.f32.mxu0 %vm984_vm4, %v6021_v7  ;;  %4856 = vmatmul.mubr.msk.f32.gmra.mrb[2].mxu1 %vm984_vm4, %v6028_v37  ;;  %v1309_v13 = vrot.slane %v6021_v7, 7 }
 0x118   : > { %v6042_v18 = vmul.f32 %v5831_v39, %v759_v25  ;;  %v669_v17 = vadd.f32 %v4676_v16, %v5864_v56  ;;  %v663_v24 = vpop.f32.mrb[21].mxu0  ;;  %4724 = vmatmul.mubr.msk.f32.gmra.mrb[50].mxu0 %vm984_vm4, %v6012_v5 }
 0x119   : > { %v6048_v58 = vmul.f32 %v5810_v31, %v758_v29  ;;  %v664_v62 = vadd.f32 %v5864_v56, %v663_v24  ;;  %v6052_v35 = vsel %vm1279_vm5, %v1307_v53, %v1309_v13  ;;  %v6055_v3 = vsel %vm1279_vm5, %v1309_v13, %v1311_v15 }
 0x11a   : > { %v761_v27 = vmax.f32 %v669_v17, 0.0  ;;  %4858 = vmatprep.mubr.msk.f32.mxu1 %vm984_vm4, %v6052_v35  ;;  %v1315_v39 = vrot.slane %v6042_v18, 7 }
 0x11b   : > { %v760_v6 = vmax.f32 %v664_v62, 0.0  ;;  %v4679_v28 = vpop.f32.mrb[22].mxu0  ;;  %4726 = vmatprep.mubr.msk.f32.mxu0 %vm984_vm4, %v6048_v58  ;;  %4859 = vmatmul.mubr.msk.f32.gmra.mrb[4].mxu1 %vm984_vm4, %v6055_v3  ;;  %v1313_v31 = vrot.slane %v6048_v58, 7 }
 0x11c   : > { %v6066_v53 = vmul.f32 %v5835_v41, %v761_v27  ;;  %v679_v26 = vadd.f32 %v4679_v28, %v5864_v56  ;;  %v673_v25 = vpop.f32.mrb[23].mxu0  ;;  %4727 = vmatmul.mubr.msk.f32.gmra.mrb[52].mxu0 %vm984_vm4, %v6042_v18 }
 0x11d   : > { %v6072_v29 = vmul.f32 %v5825_v36, %v760_v6  ;;  %v674_v16 = vadd.f32 %v5864_v56, %v673_v25  ;;  %v6076_v13 = vsel %vm1279_vm5, %v1311_v15, %v1313_v31  ;;  %v6079_v17 = vsel %vm1279_vm5, %v1313_v31, %v1315_v39 }
 0x11e   : > { %v763_v24 = vmax.f32 %v679_v26, 0.0  ;;  %4861 = vmatprep.mubr.msk.f32.mxu1 %vm984_vm4, %v6076_v13  ;;  %v1319_v41 = vrot.slane %v6066_v53, 7 }
 0x11f   : > { %v762_v62 = vmax.f32 %v674_v16, 0.0  ;;  %v4682_v27 = vpop.f32.mrb[24].mxu0  ;;  %4729 = vmatprep.mubr.msk.f32.mxu0 %vm984_vm4, %v6072_v29  ;;  %4862 = vmatmul.mubr.msk.f32.gmra.mrb[6].mxu1 %vm984_vm4, %v6079_v17  ;;  %v1317_v36 = vrot.slane %v6072_v29, 7 }
 0x120   : > { %v6090_v15 = vmul.f32 %v5839_v43, %v763_v24  ;;  %v689_v6 = vadd.f32 %v4682_v27, %v5864_v56  ;;  %v683_v28 = vpop.f32.mrb[25].mxu0  ;;  %4730 = vmatmul.mubr.msk.f32.gmra.mrb[54].mxu0 %vm984_vm4, %v6066_v53 }
 0x121   : > { %v6096_v31 = vmul.f32 %v5829_v38, %v762_v62  ;;  %v684_v26 = vadd.f32 %v5864_v56, %v683_v28  ;;  %v6100_v25 = vsel %vm1279_vm5, %v1315_v39, %v1317_v36  ;;  %v6103_v16 = vsel %vm1279_vm5, %v1317_v36, %v1319_v41 }
 0x122   : > { %v765_v2 = vmax.f32 %v689_v6, 0.0  ;;  %4864 = vmatprep.mubr.msk.f32.mxu1 %vm984_vm4, %v6100_v25  ;;  %v1323_v43 = vrot.slane %v6090_v15, 7 }
 0x123   : > { %v764_v24 = vmax.f32 %v684_v26, 0.0  ;;  %v4685_v27 = vpop.f32.mrb[26].mxu0  ;;  %4732 = vmatprep.mubr.msk.f32.mxu0 %vm984_vm4, %v6096_v31  ;;  %4865 = vmatmul.mubr.msk.f32.gmra.mrb[8].mxu1 %vm984_vm4, %v6103_v16  ;;  %v1321_v38 = vrot.slane %v6096_v31, 7 }
 0x124   : > { %v6114_v39 = vmul.f32 %v5843_v45, %v765_v2  ;;  %v699_v62 = vadd.f32 %v4685_v27, %v5864_v56  ;;  %v693_v36 = vpop.f32.mrb[27].mxu0  ;;  %4733 = vmatmul.mubr.msk.f32.gmra.mrb[56].mxu0 %vm984_vm4, %v6090_v15 }
 0x125   : > { %v6120_v6 = vmul.f32 %v5833_v40, %v764_v24  ;;  %v694_v28 = vadd.f32 %v5864_v56, %v693_v36  ;;  %v6124_v26 = vsel %vm1279_vm5, %v1319_v41, %v1321_v38  ;;  %v6127_v30 = vsel %vm1279_vm5, %v1321_v38, %v1323_v43 }
 0x126   : > { %v767_v1 = vmax.f32 %v699_v62, 0.0  ;;  %4867 = vmatprep.mubr.msk.f32.mxu1 %vm984_vm4, %v6124_v26  ;;  %v1327_v45 = vrot.slane %v6114_v39, 7 }
 0x127   : > { %v766_v2 = vmax.f32 %v694_v28, 0.0  ;;  %v4688_v27 = vpop.f32.mrb[28].mxu0  ;;  %4735 = vmatprep.mubr.msk.f32.mxu0 %vm984_vm4, %v6120_v6  ;;  %4868 = vmatmul.mubr.msk.f32.gmra.mrb[10].mxu1 %vm984_vm4, %v6127_v30  ;;  %v1325_v40 = vrot.slane %v6120_v6, 7 }
 0x128   : > { %v6138_v41 = vmul.f32 %v5847_v47, %v767_v1  ;;  %v709_v24 = vadd.f32 %v4688_v27, %v5864_v56  ;;  %v703_v38 = vpop.f32.mrb[29].mxu0  ;;  %4736 = vmatmul.mubr.msk.f32.gmra.mrb[58].mxu0 %vm984_vm4, %v6114_v39 }
 0x129   : > { %v6144_v62 = vmul.f32 %v5837_v42, %v766_v2  ;;  %v704_v36 = vadd.f32 %v5864_v56, %v703_v38  ;;  %v6148_v28 = vsel %vm1279_vm5, %v1323_v43, %v1325_v40  ;;  %v6151_v50 = vsel %vm1279_vm5, %v1325_v40, %v1327_v45 }
 0x12a   : > { %7144 = vst [vmem:[#allocation8_spill] sm:$0xff] %v6138_v41  ;;  %v769_v14 = vmax.f32 %v709_v24, 0.0  ;;  %4870 = vmatprep.mubr.msk.f32.mxu1 %vm984_vm4, %v6148_v28  ;;  %v1331_v47 = vrot.slane %v6138_v41, 7  ;;  %v933_v24 = vpop.permute.xlu0 %932 }
 0x12b   : > { %7145 = vst [vmem:[#allocation9_spill] sm:$0xff] %v6144_v62  ;;  %v768_v1 = vmax.f32 %v704_v36, 0.0  ;;  %v4691_v27 = vpop.f32.mrb[30].mxu0  ;;  %4738 = vmatprep.mubr.msk.f32.mxu0 %vm984_vm4, %v6144_v62  ;;  %4871 = vmatmul.mubr.msk.f32.gmra.mrb[12].mxu1 %vm984_vm4, %v6151_v50  ;;  %v1329_v42 = vrot.slane %v6144_v62, 7 }
 0x12c   : > { %v6162_v43 = vmul.f32 %v5849_v49, %v769_v14  ;;  %v719_v2 = vadd.f32 %v4691_v27, %v5864_v56  ;;  %v713_v40 = vpop.f32.mrb[31].mxu0  ;;  %4739 = vmatmul.mubr.msk.f32.gmra.mrb[60].mxu0 %vm984_vm4, %v6138_v41 }
 0x12d   : > { %v6168_v38 = vmul.f32 %v5841_v44, %v768_v1  ;;  %v714_v36 = vadd.f32 %v5864_v56, %v713_v40  ;;  %v6172_v48 = vsel %vm1279_vm5, %v1327_v45, %v1329_v42  ;;  %v6175_v62 = vsel %vm1279_vm5, %v1329_v42, %v1331_v47 }
 0x12e   : > { %7146 = vst [vmem:[#allocation10_spill] sm:$0xff] %v6162_v43  ;;  %v771_v49 = vmax.f32 %v719_v2, 0.0  ;;  %4873 = vmatprep.mubr.msk.f32.mxu1 %vm984_vm4, %v6172_v48  ;;  %v1335_v14 = vrot.slane %v6162_v43, 7 }
 0x12f   : > { %v770_v27 = vmax.f32 %v714_v36, 0.0  ;;  %v4694_v41 = vpop.f32.mrb[32].mxu0  ;;  %4741 = vmatprep.mubr.msk.f32.mxu0 %vm984_vm4, %v6168_v38  ;;  %4874 = vmatmul.mubr.msk.f32.gmra.mrb[14].mxu1 %vm984_vm4, %v6175_v62  ;;  %v1333_v44 = vrot.slane %v6168_v38, 7 }
 0x130   : > { %v6186_v45 = vmul.f32 %v5853_v51, %v771_v49  ;;  %v729_v1 = vadd.f32 %v4694_v41, %v5864_v56  ;;  %v723_v42 = vpop.f32.mrb[33].mxu0  ;;  %4742 = vmatmul.mubr.msk.f32.gmra.mrb[62].mxu0 %vm984_vm4, %v6162_v43  ;;  %v938_v43 = vpop.permute.xlu0 %937 }
 0x131   : > { %v6192_v2 = vmul.f32 %v5845_v46, %v770_v27  ;;  %v724_v40 = vadd.f32 %v5864_v56, %v723_v42  ;;  %4748 = vmatprep.mubr.msk.f32.mxu0 %vm984_vm4, %v5893_v63  ;;  %v6198_v36 = vsel %vm1279_vm5, %v1331_v47, %v1333_v44  ;;  %v6201_v51 = vsel %vm1279_vm5, %v1333_v44, %v1335_v14 }
 0x132   : > { %7147 = vst [vmem:[#allocation11_spill] sm:$0xff] %v6186_v45  ;;  %v773_v49 = vmax.f32 %v729_v1, 0.0  ;;  %4876 = vmatprep.mubr.msk.f32.mxu1 %vm984_vm4, %v6198_v36  ;;  %v1961_v41 = vrot.slane %v6186_v45, 7  ;;  %v1289_v44 = vrot.slane %v5914_v8, 7 }
 0x133   : > { %v772_v46 = vmax.f32 %v724_v40, 0.0  ;;  %v4697_v27 = vpop.f32.mrb[34].mxu0  ;;  %4877 = vmatmul.mubr.msk.f32.gmra.mrb[16].mxu1 %vm984_vm4, %v6201_v51  ;;  %v1959_v63 = vrot.slane %v6192_v2, 7 }
 0x134   : > { %v6209_v42 = vmul.f32 %v938_v43, %v773_v49  ;;  %v733_v47 = vpop.f32.mrb[35].mxu0  ;;  %4749 = vmatmul.mubr.msk.f32.vlgmr.msra.gmra.mrb[36].mxu0 %vm984_vm4, %v5896_v0  ;;  %v1291_v49 = vrot.slane %v5926_v12, 7 }
 0x135   : > { %v6214_v1 = vmul.f32 %v933_v24, %v772_v46  ;;  %v734_v45 = vadd.f32 %v5864_v56, %v733_v47  ;;  %4751 = vmatprep.mubr.msk.f32.mxu0 %vm984_vm4, %v5918_v10  ;;  %v6220_v40 = vsel %vm1279_vm5, %v1335_v14, %v1959_v63  ;;  %v6223_v27 = vsel %vm1279_vm5, %v1959_v63, %v1961_v41  ;;  %v4164_v56 = vld [vmem:[%s7094_s4 + $0x60] sm:$0xff]  ;;  %v4165_v46 = vld [vmem:[%s7094_s4 + $0x68] sm:$0xf] }
 0x136   : > { %7148 = vst [vmem:[#allocation12_spill] sm:$0xff] %v6209_v42  ;;  %7149 = vst [vmem:[#allocation13_spill] sm:$0xff] %v6220_v40  ;;  %v3189_v43 = vrot.slane %v6209_v42, 1  ;;  %4879 = vmatprep.mubr.msk.f32.mxu1 %vm984_vm4, %v6220_v40  ;;  %5187 = vmatpush3.bf16.msk.msra.mxu0 %vm5767_vm3, %v5879_v20  ;;  %v943_v20 = vpop.permute.xlu1 %942  ;;  %v1293_v47 = vrot.slane %v5942_v55, 7  ;;  %v6262_v42 = vpack.c.bf16 %v4165_v46, %v4164_v56  ;;  %v1297_v56 = vrot.slane %v5954_v52, 7  ;;  %v7157_v46 = vld [vmem:[#allocation9_spill] sm:$0xff] }
 0x137   : > { %7150 = vst [vmem:[#allocation14_spill] sm:$0xff] %v6223_v27  ;;  %v7115_v24 = vrot.slane %v6214_v1, 7  ;;  %v774_v14 = vmax.f32 %v734_v45, 0.0  ;;  %4880 = vmatmul.mubr.msk.f32.gmra.mrb[18].mxu1 %vm984_vm4, %v6223_v27  ;;  %5190 = vmatprep.subr.msk.bf16.mxu0 %vm5767_vm3, %v5781_v22  ;;  %v7151_v45 = vrot.slane %v5882_v57, 7 }
 0x138   : > { %4752 = vmatmul.mubr.msk.f32.gmra.mrb[38].mxu0 %vm984_vm4, %v5923_v11  ;;  %4886 = vmatprep.mubr.msk.f32.mxu1 %vm984_vm4, %v5886_v60  ;;  %v7153_v60 = vrot.slane %v6214_v1, 1 }
 0x139   : > { %v6252_v63 = vsel %vm1279_vm5, %v7151_v45, %v1289_v44  ;;  %v978_v0 = vmul.f32 %v943_v20, %v774_v14  ;;  %v6260_v27 = vsel %vm1279_vm5, %v1961_v41, %v7115_v24  ;;  %v6272_v14 = vsel %vm1279_vm5, %v1289_v44, %v1291_v49  ;;  %v7162_v24 = vld [vmem:[#allocation6_spill] sm:$0xff] }
 0x13a   : > { %4754 = vmatprep.mubr.msk.f32.mxu0 %vm984_vm4, %v6252_v63  ;;  %7152 = vst [vmem:[#allocation15_spill] sm:$0xff] %v6260_v27  ;;  %v6267_v40 = vsel %vm1605_vm6, %v7153_v60, %v3189_v43  ;;  %v1295_v20 = vrot.slane %v5946_v23, 7  ;;  %v6281_v41 = vsel %vm1279_vm5, %v1291_v49, %v1293_v47  ;;  %v7159_v60 = vld [vmem:[#allocation2_spill] sm:$0xff]  ;;  %v1621_v27 = vrot.slane %v5954_v52, 1 }
 0x13b   : > { %7154 = vst [vmem:[#allocation16_spill] sm:$0xff] %v6267_v40  ;;  %v3191_v45 = vrot.slane %v978_v0, 1  ;;  %4887 = vmatmul.mubr.msk.f32.vlgmr.msra.gmra.mrb[20].mxu1 %vm984_vm4, %v5882_v57 }
 0x13c   : > { %5205 = vmatpush3.bf16.msk.msra.mxu1 %vm5767_vm3, %v5989_v32  ;;  %4755 = vmatmul.mubr.msk.f32.gmra.mrb[40].mxu0 %vm984_vm4, %v6272_v14  ;;  %v6297_v32 = vsel %vm1279_vm5, %v1293_v47, %v1295_v20  ;;  %v6304_v0 = vsel %vm1279_vm5, %v1295_v20, %v1297_v56  ;;  %v7158_v47 = vld [vmem:[#allocation8_spill] sm:$0xff]  ;;  %v1613_v20 = vrot.slane %v5914_v8, 1 }
 0x13d   : > { %4889 = vmatprep.mubr.msk.f32.mxu1 %vm984_vm4, %v5914_v8  ;;  %4757 = vmatprep.mubr.msk.f32.mxu0 %vm984_vm4, %v6281_v41  ;;  %v6289_v44 = vsel %vm1605_vm6, %v3189_v43, %v3191_v45  ;;  %v7156_v43 = vrot.slane %v5958_v61, 7  ;;  %v7160_v45 = vld [vmem:[#allocation10_spill] sm:$0xff]  ;;  %v4196_v8 = vld [vmem:[%s7094_s4 + $0x78] sm:$0xf] }
 0x13e   : > { %7155 = vst [vmem:[#allocation17_spill] sm:$0xff] %v6289_v44  ;;  %5208 = vmatprep.subr.msk.bf16.mxu1 %vm5767_vm3, %v6262_v42  ;;  %v7164_v44 = vrot.slane %v5882_v57, 1  ;;  %v1619_v57 = vrot.slane %v5946_v23, 1 }
 0x13f   : > { %4890 = vmatmul.mubr.msk.f32.gmra.mrb[22].mxu1 %vm984_vm4, %v5926_v12  ;;  %v6313_v49 = vsel %vm1279_vm5, %v1297_v56, %v7156_v43  ;;  %v7161_v56 = vld [vmem:[#allocation5_spill] sm:$0xff]  ;;  %v1615_v43 = vrot.slane %v5926_v12, 1  ;;  %v4195_v12 = vld [vmem:[%s7094_s4 + $0x70] sm:$0xff] }
 0x140   : > { %4758 = vmatmul.mubr.msk.f32.gmra.mrb[42].mxu0 %vm984_vm4, %v6297_v32  ;;  %4892 = vmatprep.mubr.msk.f32.mxu1 %vm984_vm4, %v5942_v55  ;;  %v1614_v40 = vsel %vm1605_vm6, %v7164_v44, %v1613_v20  ;;  %v6427_v44 = vpack.c.bf16 %v4196_v8, %v4195_v12  ;;  %v1623_v8 = vrot.slane %v5958_v61, 1  ;;  %v6453_v12 = vsel %vm1605_vm6, %v1619_v57, %v1621_v27 }
 0x141   : > { %4760 = vmatprep.mubr.msk.f32.mxu0 %vm984_vm4, %v6304_v0  ;;  %7165 = vst [vmem:[#allocation9_spill] sm:$0xff] %v6453_v12 }
 0x143   : > { %4893 = vmatmul.mubr.msk.f32.gmra.mrb[24].mxu1 %vm984_vm4, %v5946_v23 }
 0x144   : > { %4761 = vmatmul.mubr.msk.f32.gmra.mrb[44].mxu0 %vm984_vm4, %v6313_v49  ;;  %4895 = vmatprep.mubr.msk.f32.mxu1 %vm984_vm4, %v5954_v52 }
 0x145   : > { %4763 = vmatprep.mubr.msk.f32.mxu0 %vm984_vm4, %v5998_v59 }
 0x147   : > { %4896 = vmatmul.mubr.msk.f32.gmra.mrb[26].mxu1 %vm984_vm4, %v5958_v61 }
 0x148   : > { %4764 = vmatmul.mubr.msk.f32.gmra.mrb[46].mxu0 %vm984_vm4, %v6001_v34  ;;  %4898 = vmatprep.mubr.msk.f32.mxu1 %vm984_vm4, %v5969_v54  ;;  %v7191_v19 = vld [vmem:[#allocation9_spill] sm:$0xff] }
 0x149   : > { %4766 = vmatprep.mubr.msk.f32.mxu0 %vm984_vm4, %v6025_v9 }
 0x14b   : > { %4899 = vmatmul.mubr.msk.f32.gmra.mrb[0].mxu1 %vm984_vm4, %v5963_v4 }
 0x14c   : > { %4767 = vmatmul.mubr.msk.f32.gmra.mrb[48].mxu0 %vm984_vm4, %v6028_v37  ;;  %4901 = vmatprep.mubr.msk.f32.mxu1 %vm984_vm4, %v5992_v33 }
 0x14d   : > { %4769 = vmatprep.mubr.msk.f32.mxu0 %vm984_vm4, %v6052_v35 }
 0x14f   : > { %4902 = vmatmul.mubr.msk.f32.gmra.mrb[2].mxu1 %vm984_vm4, %v5984_v21 }
 0x150   : > { %4770 = vmatmul.mubr.msk.f32.gmra.mrb[50].mxu0 %vm984_vm4, %v6055_v3  ;;  %4904 = vmatprep.mubr.msk.f32.mxu1 %vm984_vm4, %v6021_v7 }
 0x151   : > { %4772 = vmatprep.mubr.msk.f32.mxu0 %vm984_vm4, %v6076_v13 }
 0x153   : > { %4905 = vmatmul.mubr.msk.f32.gmra.mrb[4].mxu1 %vm984_vm4, %v6012_v5 }
 0x154   : > { %4773 = vmatmul.mubr.msk.f32.gmra.mrb[52].mxu0 %vm984_vm4, %v6079_v17  ;;  %4907 = vmatprep.mubr.msk.f32.mxu1 %vm984_vm4, %v6048_v58 }
 0x155   : > { %4775 = vmatprep.mubr.msk.f32.mxu0 %vm984_vm4, %v6100_v25 }
 0x157   : > { %4908 = vmatmul.mubr.msk.f32.gmra.mrb[6].mxu1 %vm984_vm4, %v6042_v18 }
 0x158   : > { %4776 = vmatmul.mubr.msk.f32.gmra.mrb[54].mxu0 %vm984_vm4, %v6103_v16  ;;  %4910 = vmatprep.mubr.msk.f32.mxu1 %vm984_vm4, %v6072_v29 }
 0x159   : > { %4778 = vmatprep.mubr.msk.f32.mxu0 %vm984_vm4, %v6124_v26 }
 0x15b   : > { %4911 = vmatmul.mubr.msk.f32.gmra.mrb[8].mxu1 %vm984_vm4, %v6066_v53 }
 0x15c   : > { %4779 = vmatmul.mubr.msk.f32.gmra.mrb[56].mxu0 %vm984_vm4, %v6127_v30  ;;  %4913 = vmatprep.mubr.msk.f32.mxu1 %vm984_vm4, %v6096_v31 }
 0x15d   : > { %4781 = vmatprep.mubr.msk.f32.mxu0 %vm984_vm4, %v6148_v28 }
 0x15f   : > { %4914 = vmatmul.mubr.msk.f32.gmra.mrb[10].mxu1 %vm984_vm4, %v6090_v15 }
 0x160   : > { %4782 = vmatmul.mubr.msk.f32.gmra.mrb[58].mxu0 %vm984_vm4, %v6151_v50  ;;  %4916 = vmatprep.mubr.msk.f32.mxu1 %vm984_vm4, %v6120_v6 }
 0x161   : > { %4784 = vmatprep.mubr.msk.f32.mxu0 %vm984_vm4, %v6172_v48 }
 0x163   : > { %4917 = vmatmul.mubr.msk.f32.gmra.mrb[12].mxu1 %vm984_vm4, %v6114_v39 }
 0x164   : > { %4785 = vmatmul.mubr.msk.f32.gmra.mrb[60].mxu0 %vm984_vm4, %v6175_v62  ;;  %4919 = vmatprep.mubr.msk.f32.mxu1 %vm984_vm4, %v7157_v46 }
 0x165   : > { %4787 = vmatprep.mubr.msk.f32.mxu0 %vm984_vm4, %v6198_v36 }
 0x167   : > { %4920 = vmatmul.mubr.msk.f32.gmra.mrb[14].mxu1 %vm984_vm4, %v7158_v47 }
 0x168   : > { %4788 = vmatmul.mubr.msk.f32.gmra.mrb[62].mxu0 %vm984_vm4, %v6201_v51  ;;  %4922 = vmatprep.mubr.msk.f32.mxu1 %vm984_vm4, %v6168_v38 }
 0x169   : > { %4794 = vmatprep.mubr.msk.f32.mxu0 %vm984_vm4, %v7159_v60  ;;  %v7163_v60 = vld [vmem:[#allocation11_spill] sm:$0xff] }
 0x16b   : > { %4923 = vmatmul.mubr.msk.f32.gmra.mrb[16].mxu1 %vm984_vm4, %v7160_v45 }
 0x16c   : > { %4795 = vmatmul.mubr.msk.f32.vlgmr.msra.gmra.mrb[36].mxu0 %vm984_vm4, %v7161_v56  ;;  %4925 = vmatprep.mubr.msk.f32.mxu1 %vm984_vm4, %v6192_v2  ;;  %v1617_v56 = vrot.slane %v5942_v55, 1 }
 0x16d   : > { %4797 = vmatprep.mubr.msk.f32.mxu0 %vm984_vm4, %v7162_v24  ;;  %5193 = vmatpush3.bf16.msk.msra.mxu0 %vm5767_vm3, %v5781_v22  ;;  %v6422_v22 = vsel %vm1605_vm6, %v1613_v20, %v1615_v43  ;;  %v1627_v20 = vrot.slane %v5963_v4, 1 }
 0x16e   : > { %v6431_v55 = vsel %vm1605_vm6, %v1615_v43, %v1617_v56 }
 0x16f   : > { %4926 = vmatmul.mubr.msk.f32.gmra.mrb[18].mxu1 %vm984_vm4, %v7163_v60 }
 0x170   : > { %4798 = vmatmul.mubr.msk.f32.gmra.mrb[38].mxu0 %vm984_vm4, %v1614_v40  ;;  %4932 = vmatprep.mubr.msk.f32.mxu1 %vm984_vm4, %v7162_v24  ;;  %v6440_v24 = vsel %vm1605_vm6, %v1617_v56, %v1619_v57  ;;  %v1629_v56 = vrot.slane %v5992_v33, 1  ;;  %v1631_v57 = vrot.slane %v5984_v21, 1 }
 0x171   : > { %4800 = vmatprep.mubr.msk.f32.mxu0 %vm984_vm4, %v6422_v22 }
 0x173   : > { %4933 = vmatmul.mubr.msk.f32.vlgmr.msra.gmra.mrb[20].mxu1 %vm984_vm4, %v1614_v40  ;;  %v6461_v40 = vsel %vm1605_vm6, %v1621_v27, %v1623_v8 }
 0x174   : > { %5211 = vmatpush3.bf16.msk.msra.mxu1 %vm5767_vm3, %v6262_v42  ;;  %4801 = vmatmul.mubr.msk.f32.gmra.mrb[40].mxu0 %vm984_vm4, %v6431_v55  ;;  %v1625_v42 = vrot.slane %v5969_v54, 1  ;;  %7166 = vst [vmem:[#allocation8_spill] sm:$0xff] %v6461_v40 }
 0x175   : > { %4935 = vmatprep.mubr.msk.f32.mxu1 %vm984_vm4, %v6422_v22  ;;  %4803 = vmatprep.mubr.msk.f32.mxu0 %vm984_vm4, %v6440_v24 }
 0x176   : > { %5214 = vmatprep.subr.msk.bf16.mxu1 %vm5767_vm3, %v6427_v44  ;;  %v6469_v43 = vsel %vm1605_vm6, %v1623_v8, %v1625_v42  ;;  %v6477_v27 = vsel %vm1605_vm6, %v1625_v42, %v1627_v20  ;;  %v6485_v8 = vsel %vm1605_vm6, %v1627_v20, %v1629_v56  ;;  %v6493_v42 = vsel %vm1605_vm6, %v1629_v56, %v1631_v57 }
 0x177   : > { %4936 = vmatmul.mubr.msk.f32.gmra.mrb[22].mxu1 %vm984_vm4, %v6431_v55  ;;  %7167 = vst [vmem:[#allocation2_spill] sm:$0xff] %v6469_v43  ;;  %7168 = vst [vmem:[#allocation10_spill] sm:$0xff] %v6477_v27 }
 0x178   : > { %4804 = vmatmul.mubr.msk.f32.gmra.mrb[42].mxu0 %vm984_vm4, %v6453_v12  ;;  %4938 = vmatprep.mubr.msk.f32.mxu1 %vm984_vm4, %v6440_v24  ;;  %7169 = vst [vmem:[#allocation5_spill] sm:$0xff] %v6485_v8  ;;  %7170 = vst [vmem:[#allocation6_spill] sm:$0xff] %v6493_v42 }
 0x179   : > { %4806 = vmatprep.mubr.msk.f32.mxu0 %vm984_vm4, %v6461_v40 }
 0x17b   : > { %4939 = vmatmul.mubr.msk.f32.gmra.mrb[24].mxu1 %vm984_vm4, %v6453_v12  ;;  %v1633_v12 = vrot.slane %v6021_v7, 1 }
 0x17c   : > { %4807 = vmatmul.mubr.msk.f32.gmra.mrb[44].mxu0 %vm984_vm4, %v6469_v43  ;;  %4941 = vmatprep.mubr.msk.f32.mxu1 %vm984_vm4, %v6461_v40  ;;  %v1635_v40 = vrot.slane %v6012_v5, 1 }
 0x17d   : > { %4809 = vmatprep.mubr.msk.f32.mxu0 %vm984_vm4, %v6477_v27  ;;  %v6501_v20 = vsel %vm1605_vm6, %v1631_v57, %v1633_v12 }
 0x17e   : > { %7171 = vst [vmem:[#allocation11_spill] sm:$0xff] %v6501_v20  ;;  %v6509_v56 = vsel %vm1605_vm6, %v1633_v12, %v1635_v40 }
 0x17f   : > { %4942 = vmatmul.mubr.msk.f32.gmra.mrb[26].mxu1 %vm984_vm4, %v6469_v43  ;;  %v1637_v43 = vrot.slane %v6048_v58, 1  ;;  %7172 = vst [vmem:[#allocation18_spill] sm:$0xff] %v6509_v56 }
 0x180   : > { %4810 = vmatmul.mubr.msk.f32.gmra.mrb[46].mxu0 %vm984_vm4, %v6485_v8  ;;  %4944 = vmatprep.mubr.msk.f32.mxu1 %vm984_vm4, %v6477_v27  ;;  %v1639_v27 = vrot.slane %v6042_v18, 1 }
 0x181   : > { %4812 = vmatprep.mubr.msk.f32.mxu0 %vm984_vm4, %v6493_v42  ;;  %v6517_v57 = vsel %vm1605_vm6, %v1635_v40, %v1637_v43 }
 0x182   : > { %7173 = vst [vmem:[#allocation19_spill] sm:$0xff] %v6517_v57  ;;  %v6525_v12 = vsel %vm1605_vm6, %v1637_v43, %v1639_v27 }
 0x183   : > { %4945 = vmatmul.mubr.msk.f32.gmra.mrb[0].mxu1 %vm984_vm4, %v6485_v8  ;;  %v1641_v8 = vrot.slane %v6072_v29, 1  ;;  %7174 = vst [vmem:[#allocation20_spill] sm:$0xff] %v6525_v12 }
 0x184   : > { %4813 = vmatmul.mubr.msk.f32.gmra.mrb[48].mxu0 %vm984_vm4, %v6501_v20  ;;  %4947 = vmatprep.mubr.msk.f32.mxu1 %vm984_vm4, %v6493_v42  ;;  %v1643_v42 = vrot.slane %v6066_v53, 1 }
 0x185   : > { %4815 = vmatprep.mubr.msk.f32.mxu0 %vm984_vm4, %v6509_v56  ;;  %v6533_v40 = vsel %vm1605_vm6, %v1639_v27, %v1641_v8 }
 0x186   : > { %7175 = vst [vmem:[#allocation21_spill] sm:$0xff] %v6533_v40  ;;  %v6541_v43 = vsel %vm1605_vm6, %v1641_v8, %v1643_v42 }
 0x187   : > { %4948 = vmatmul.mubr.msk.f32.gmra.mrb[2].mxu1 %vm984_vm4, %v6501_v20  ;;  %v1645_v20 = vrot.slane %v6096_v31, 1  ;;  %7176 = vst [vmem:[#allocation22_spill] sm:$0xff] %v6541_v43 }
 0x188   : > { %4816 = vmatmul.mubr.msk.f32.gmra.mrb[50].mxu0 %vm984_vm4, %v6517_v57  ;;  %4950 = vmatprep.mubr.msk.f32.mxu1 %vm984_vm4, %v6509_v56  ;;  %v1647_v56 = vrot.slane %v6090_v15, 1 }
 0x189   : > { %4818 = vmatprep.mubr.msk.f32.mxu0 %vm984_vm4, %v6525_v12  ;;  %v6549_v27 = vsel %vm1605_vm6, %v1643_v42, %v1645_v20 }
 0x18a   : > { %7177 = vst [vmem:[#allocation23_spill] sm:$0xff] %v6549_v27  ;;  %v6557_v8 = vsel %vm1605_vm6, %v1645_v20, %v1647_v56 }
 0x18b   : > { %4951 = vmatmul.mubr.msk.f32.gmra.mrb[4].mxu1 %vm984_vm4, %v6517_v57  ;;  %v1649_v57 = vrot.slane %v6120_v6, 1  ;;  %7178 = vst [vmem:[#allocation24_spill] sm:$0xff] %v6557_v8 }
 0x18c   : > { %4819 = vmatmul.mubr.msk.f32.gmra.mrb[52].mxu0 %vm984_vm4, %v6533_v40  ;;  %4953 = vmatprep.mubr.msk.f32.mxu1 %vm984_vm4, %v6525_v12  ;;  %v1651_v12 = vrot.slane %v6114_v39, 1 }
 0x18d   : > { %4821 = vmatprep.mubr.msk.f32.mxu0 %vm984_vm4, %v6541_v43  ;;  %v6565_v42 = vsel %vm1605_vm6, %v1647_v56, %v1649_v57 }
 0x18e   : > { %7179 = vst [vmem:[#allocation25_spill] sm:$0xff] %v6565_v42  ;;  %v6573_v20 = vsel %vm1605_vm6, %v1649_v57, %v1651_v12 }
 0x18f   : > { %4954 = vmatmul.mubr.msk.f32.gmra.mrb[6].mxu1 %vm984_vm4, %v6533_v40  ;;  %v1653_v40 = vrot.slane %v7157_v46, 1 }
 0x190   : > { %4822 = vmatmul.mubr.msk.f32.gmra.mrb[54].mxu0 %vm984_vm4, %v6549_v27  ;;  %4956 = vmatprep.mubr.msk.f32.mxu1 %vm984_vm4, %v6541_v43  ;;  %v1655_v43 = vrot.slane %v7158_v47, 1 }
 0x191   : > { %4824 = vmatprep.mubr.msk.f32.mxu0 %vm984_vm4, %v6557_v8  ;;  %v6581_v56 = vsel %vm1605_vm6, %v1651_v12, %v1653_v40 }
 0x192   : > { %7180 = vst [vmem:[#allocation26_spill] sm:$0xff] %v6581_v56  ;;  %v6589_v57 = vsel %vm1605_vm6, %v1653_v40, %v1655_v43 }
 0x193   : > { %4957 = vmatmul.mubr.msk.f32.gmra.mrb[8].mxu1 %vm984_vm4, %v6549_v27  ;;  %v1657_v27 = vrot.slane %v6168_v38, 1 }
 0x194   : > { %4825 = vmatmul.mubr.msk.f32.gmra.mrb[56].mxu0 %vm984_vm4, %v6565_v42  ;;  %4959 = vmatprep.mubr.msk.f32.mxu1 %vm984_vm4, %v6557_v8  ;;  %v1659_v8 = vrot.slane %v7160_v45, 1 }
 0x195   : > { %4827 = vmatprep.mubr.msk.f32.mxu0 %vm984_vm4, %v6573_v20  ;;  %v6597_v12 = vsel %vm1605_vm6, %v1655_v43, %v1657_v27 }
 0x196   : > { %v6605_v40 = vsel %vm1605_vm6, %v1657_v27, %v1659_v8 }
 0x197   : > { %4960 = vmatmul.mubr.msk.f32.gmra.mrb[10].mxu1 %vm984_vm4, %v6565_v42  ;;  %v1661_v42 = vrot.slane %v6192_v2, 1  ;;  %7181 = vst [vmem:[#allocation27_spill] sm:$0xff] %v6605_v40 }
 0x198   : > { %4828 = vmatmul.mubr.msk.f32.gmra.mrb[58].mxu0 %vm984_vm4, %v6581_v56  ;;  %4962 = vmatprep.mubr.msk.f32.mxu1 %vm984_vm4, %v6573_v20 }
 0x199   : > { %4830 = vmatprep.mubr.msk.f32.mxu0 %vm984_vm4, %v6589_v57  ;;  %v6612_v43 = vsel %vm1605_vm6, %v1659_v8, %v1661_v42  ;;  %v7182_v8 = vrot.slane %v6214_v1, 1 }
 0x19b   : > { %4963 = vmatmul.mubr.msk.f32.gmra.mrb[12].mxu1 %vm984_vm4, %v6581_v56  ;;  %v2450_v56 = vrot.slane %v7163_v60, 1 }
 0x19c   : > { %4831 = vmatmul.mubr.msk.f32.gmra.mrb[60].mxu0 %vm984_vm4, %v6597_v12  ;;  %4965 = vmatprep.mubr.msk.f32.mxu1 %vm984_vm4, %v6589_v57 }
 0x19d   : > { %4833 = vmatprep.mubr.msk.f32.mxu0 %vm984_vm4, %v6605_v40  ;;  %v6624_v27 = vsel %vm1605_vm6, %v1661_v42, %v2450_v56 }
 0x19f   : > { %4966 = vmatmul.mubr.msk.f32.gmra.mrb[14].mxu1 %vm984_vm4, %v6597_v12 }
 0x1a0   : > { %4834 = vmatmul.mubr.msk.f32.gmra.mrb[62].mxu0 %vm984_vm4, %v6612_v43  ;;  %4968 = vmatprep.mubr.msk.f32.mxu1 %vm984_vm4, %v6605_v40  ;;  %v6635_v40 = vsel %vm1605_vm6, %v2450_v56, %v7182_v8 }
 0x1a1   : > { %4840 = vmatprep.mubr.msk.f32.mxu0 %vm984_vm4, %v5918_v10  ;;  %v4226_v10 = vld [vmem:[%s7094_s4 + $0x80] sm:$0xff] }
 0x1a3   : > { %4969 = vmatmul.mubr.msk.f32.gmra.mrb[16].mxu1 %vm984_vm4, %v6612_v43 }
 0x1a4   : > { %4841 = vmatmul.mubr.msk.f32.vlgmr.msra.gmra.mrb[36].mxu0 %vm984_vm4, %v5923_v11  ;;  %4971 = vmatprep.mubr.msk.f32.mxu1 %vm984_vm4, %v6624_v27  ;;  %v4227_v11 = vld [vmem:[%s7094_s4 + $0x88] sm:$0xf] }
 0x1a5   : > { %4843 = vmatprep.mubr.msk.f32.mxu0 %vm984_vm4, %v6252_v63  ;;  %v5218_v42 = vpack.c.bf16 %v4227_v11, %v4226_v10  ;;  %v6886_v10 = vld [vmem:[%s7095_s5] ss:$0 sm:$0xff] }
 0x1a7   : > { %4972 = vmatmul.mubr.msk.f32.gmra.mrb[18].mxu1 %vm984_vm4, %v6635_v40 }
 0x1a8   : > { %4844 = vmatmul.mubr.msk.f32.gmra.mrb[38].mxu0 %vm984_vm4, %v6272_v14  ;;  %4978 = vmatprep.mubr.msk.f32.mxu1 %vm984_vm4, %v6252_v63 }
 0x1a9   : > { %4846 = vmatprep.mubr.msk.f32.mxu0 %vm984_vm4, %v6281_v41 }
 0x1ab   : > { %4979 = vmatmul.mubr.msk.f32.vlgmr.msra.gmra.mrb[20].mxu1 %vm984_vm4, %v6272_v14 }
 0x1ac   : > { %5217 = vmatpush3.bf16.msk.msra.mxu1 %vm5767_vm3, %v6427_v44  ;;  %4847 = vmatmul.mubr.msk.f32.gmra.mrb[40].mxu0 %vm984_vm4, %v6297_v32 }
 0x1ad   : > { %4981 = vmatprep.mubr.msk.f32.mxu1 %vm984_vm4, %v6281_v41  ;;  %4849 = vmatprep.mubr.msk.f32.mxu0 %vm984_vm4, %v6304_v0 }
 0x1ae   : > { %5220 = vmatprep.subr.msk.bf16.mxu1 %vm5767_vm3, %v5218_v42 }
 0x1af   : > { %4982 = vmatmul.mubr.msk.f32.gmra.mrb[22].mxu1 %vm984_vm4, %v6297_v32 }
 0x1b0   : > { %4850 = vmatmul.mubr.msk.f32.gmra.mrb[42].mxu0 %vm984_vm4, %v6313_v49  ;;  %4984 = vmatprep.mubr.msk.f32.mxu1 %vm984_vm4, %v6304_v0 }
 0x1b3   : > { %4985 = vmatmul.mubr.msk.f32.gmra.mrb[24].mxu1 %vm984_vm4, %v6313_v49 }
 0x1b4   : > { %4987 = vmatprep.mubr.msk.f32.mxu1 %vm984_vm4, %v5998_v59  ;;  %v7183_v59 = vld [vmem:[#allocation13_spill] sm:$0xff] }
 0x1b7   : > { %4988 = vmatmul.mubr.msk.f32.gmra.mrb[26].mxu1 %vm984_vm4, %v6001_v34 }
 0x1b8   : > { %4990 = vmatprep.mubr.msk.f32.mxu1 %vm984_vm4, %v6025_v9  ;;  %v7185_v9 = vld [vmem:[#allocation14_spill] sm:$0xff] }
 0x1bb   : > { %4991 = vmatmul.mubr.msk.f32.gmra.mrb[0].mxu1 %vm984_vm4, %v6028_v37 }
 0x1bc   : > { %4993 = vmatprep.mubr.msk.f32.mxu1 %vm984_vm4, %v6052_v35  ;;  %v7188_v35 = vld [vmem:[#allocation3_spill] sm:$0xff] }
 0x1bf   : > { %4994 = vmatmul.mubr.msk.f32.gmra.mrb[2].mxu1 %vm984_vm4, %v6055_v3  ;;  %v7189_v3 = vld [vmem:[#allocation4_spill] sm:$0xff] }
 0x1c0   : > { %4996 = vmatprep.mubr.msk.f32.mxu1 %vm984_vm4, %v6076_v13  ;;  %v7190_v13 = vld [vmem:[#allocation7_spill] sm:$0xff] }
 0x1c3   : > { %4997 = vmatmul.mubr.msk.f32.gmra.mrb[4].mxu1 %vm984_vm4, %v6079_v17  ;;  %v7203_v17 = vld [vmem:[#allocation23_spill] sm:$0xff] }
 0x1c4   : > { %4999 = vmatprep.mubr.msk.f32.mxu1 %vm984_vm4, %v6100_v25  ;;  %v7206_v25 = vld [vmem:[#allocation26_spill] sm:$0xff] }
 0x1c7   : > { %5000 = vmatmul.mubr.msk.f32.gmra.mrb[6].mxu1 %vm984_vm4, %v6103_v16  ;;  %v7207_v16 = vld [vmem:[#allocation27_spill] sm:$0xff] }
 0x1c8   : > { %5002 = vmatprep.mubr.msk.f32.mxu1 %vm984_vm4, %v6124_v26  ;;  %v7209_v26 = vld [vmem:[#allocation17_spill] sm:$0xff] }
 0x1cb   : > { %5003 = vmatmul.mubr.msk.f32.gmra.mrb[8].mxu1 %vm984_vm4, %v6127_v30  ;;  %v7184_v30 = vld [vmem:[#allocation12_spill] sm:$0xff] }
 0x1cc   : > { %5005 = vmatprep.mubr.msk.f32.mxu1 %vm984_vm4, %v6148_v28  ;;  %v2700_v34 = vrot.slane %v7184_v30, 7 }
 0x1cf   : > { %5006 = vmatmul.mubr.msk.f32.gmra.mrb[10].mxu1 %vm984_vm4, %v6151_v50  ;;  %v7186_v50 = vld [vmem:[#allocation15_spill] sm:$0xff] }
 0x1d0   : > { %5008 = vmatprep.mubr.msk.f32.mxu1 %vm984_vm4, %v6172_v48  ;;  %v7187_v48 = vrot.slane %v6214_v1, 7 }
 0x1d2   : > { %v2701_v37 = vsel %vm1279_vm5, %v7187_v48, %v2700_v34 }
 0x1d3   : > { %5009 = vmatmul.mubr.msk.f32.gmra.mrb[12].mxu1 %vm984_vm4, %v6175_v62 }
 0x1d4   : > { %5011 = vmatprep.mubr.msk.f32.mxu1 %vm984_vm4, %v6198_v36 }
 0x1d7   : > { %5012 = vmatmul.mubr.msk.f32.gmra.mrb[14].mxu1 %vm984_vm4, %v6201_v51 }
 0x1d8   : > { %5014 = vmatprep.mubr.msk.f32.mxu1 %vm984_vm4, %v7183_v59 }
 0x1db   : > { %5015 = vmatmul.mubr.msk.f32.gmra.mrb[16].mxu1 %vm984_vm4, %v7185_v9 }
 0x1dc   : > { %5017 = vmatprep.mubr.msk.f32.mxu1 %vm984_vm4, %v7186_v50 }
 0x1df   : > { %5018 = vmatmul.mubr.msk.f32.gmra.mrb[18].mxu1 %vm984_vm4, %v2701_v37 }
 0x1e0   : > { %5024 = vmatprep.mubr.msk.f32.mxu1 %vm984_vm4, %v7188_v35 }
 0x1e3   : > { %5025 = vmatmul.mubr.msk.f32.vlgmr.msra.gmra.mrb[20].mxu1 %vm984_vm4, %v7189_v3 }
 0x1e4   : > { %5223 = vmatpush3.bf16.msk.msra.mxu1 %vm5767_vm3, %v5218_v42  ;;  %5027 = vmatprep.mubr.msk.f32.mxu1 %vm984_vm4, %v7190_v13 }
 0x1e7   : > { %5028 = vmatmul.mubr.msk.f32.gmra.mrb[22].mxu1 %vm984_vm4, %v5946_v23  ;;  %v3496_v23 = vld [vmem:[%s7096_s6] sm:$0xff] }
 0x1e8   : > { %5030 = vmatprep.mubr.msk.f32.mxu1 %vm984_vm4, %v5954_v52  ;;  %v3497_v52 = vld [vmem:[%s7096_s6 + $0x8] sm:$0xf] }
 0x1eb   : > { %5031 = vmatmul.mubr.msk.f32.gmra.mrb[24].mxu1 %vm984_vm4, %v5958_v61  ;;  %v5224_v61 = vpack.c.bf16 %v3497_v52, %v3496_v23 }
 0x1ec   : > { %5033 = vmatprep.mubr.msk.f32.mxu1 %vm984_vm4, %v5969_v54  ;;  %v7193_v54 = vld [vmem:[#allocation2_spill] sm:$0xff] }
 0x1ed   : > { %5226 = vmatprep.subr.msk.bf16.mxu0 %vm5767_vm3, %v5224_v61 }
 0x1ee   : > { %5229 = vmatpush3.bf16.msk.msra.mxu0 %vm5767_vm3, %v5224_v61 }
 0x1ef   : > { %5034 = vmatmul.mubr.msk.f32.gmra.mrb[26].mxu1 %vm984_vm4, %v5963_v4  ;;  %v7192_v4 = vld [vmem:[#allocation8_spill] sm:$0xff] }
 0x1f0   : > { %5036 = vmatprep.mubr.msk.f32.mxu1 %vm984_vm4, %v5992_v33  ;;  %v7195_v33 = vld [vmem:[#allocation5_spill] sm:$0xff] }
 0x1f3   : > { %5037 = vmatmul.mubr.msk.f32.gmra.mrb[0].mxu1 %vm984_vm4, %v5984_v21  ;;  %v7194_v21 = vld [vmem:[#allocation10_spill] sm:$0xff] }
 0x1f4   : > { %5039 = vmatprep.mubr.msk.f32.mxu1 %vm984_vm4, %v6021_v7  ;;  %v7198_v7 = vld [vmem:[#allocation18_spill] sm:$0xff] }
 0x1f7   : > { %5040 = vmatmul.mubr.msk.f32.gmra.mrb[2].mxu1 %vm984_vm4, %v6012_v5  ;;  %v7196_v5 = vld [vmem:[#allocation6_spill] sm:$0xff] }
 0x1f8   : > { %5042 = vmatprep.mubr.msk.f32.mxu1 %vm984_vm4, %v6048_v58  ;;  %v7200_v58 = vld [vmem:[#allocation20_spill] sm:$0xff] }
 0x1fb   : > { %5043 = vmatmul.mubr.msk.f32.gmra.mrb[4].mxu1 %vm984_vm4, %v6042_v18  ;;  %v7199_v18 = vld [vmem:[#allocation19_spill] sm:$0xff] }
 0x1fc   : > { %5045 = vmatprep.mubr.msk.f32.mxu1 %vm984_vm4, %v6072_v29  ;;  %v7202_v29 = vld [vmem:[#allocation22_spill] sm:$0xff] }
 0x1ff   : > { %5046 = vmatmul.mubr.msk.f32.gmra.mrb[6].mxu1 %vm984_vm4, %v6066_v53  ;;  %v7201_v53 = vld [vmem:[#allocation21_spill] sm:$0xff] }
 0x200   : > { %5048 = vmatprep.mubr.msk.f32.mxu1 %vm984_vm4, %v6096_v31  ;;  %v7205_v31 = vld [vmem:[#allocation25_spill] sm:$0xff] }
 0x203   : > { %5049 = vmatmul.mubr.msk.f32.gmra.mrb[8].mxu1 %vm984_vm4, %v6090_v15  ;;  %v7204_v15 = vld [vmem:[#allocation24_spill] sm:$0xff] }
 0x204   : > { %5051 = vmatprep.mubr.msk.f32.mxu1 %vm984_vm4, %v6120_v6 }
 0x207   : > { %5052 = vmatmul.mubr.msk.f32.gmra.mrb[10].mxu1 %vm984_vm4, %v6114_v39  ;;  %v7208_v39 = vld [vmem:[#allocation16_spill] sm:$0xff] }
 0x208   : > { %5054 = vmatprep.mubr.msk.f32.mxu1 %vm984_vm4, %v7157_v46 }
 0x20b   : > { %5055 = vmatmul.mubr.msk.f32.gmra.mrb[12].mxu1 %vm984_vm4, %v7158_v47 }
 0x20c   : > { %5057 = vmatprep.mubr.msk.f32.mxu1 %vm984_vm4, %v6168_v38 }
 0x20f   : > { %5058 = vmatmul.mubr.msk.f32.gmra.mrb[14].mxu1 %vm984_vm4, %v7160_v45 }
 0x210   : > { %5060 = vmatprep.mubr.msk.f32.mxu1 %vm984_vm4, %v6192_v2 }
 0x213   : > { %5061 = vmatmul.mubr.msk.f32.gmra.mrb[16].mxu1 %vm984_vm4, %v7163_v60 }
 0x214   : > { %5063 = vmatprep.mubr.msk.f32.mxu1 %vm984_vm4, %v6214_v1 }
 0x217   : > { %5064 = vmatmul.mubr.msk.f32.gmra.mrb[18].mxu1 %vm984_vm4, %v7184_v30 }
 0x218   : > { %5070 = vmatprep.mubr.msk.f32.mxu1 %vm984_vm4, %v6422_v22 }
 0x21b   : > { %5071 = vmatmul.mubr.msk.f32.vlgmr.msra.gmra.mrb[20].mxu1 %vm984_vm4, %v6431_v55  ;;  %v7197_v55 = vld [vmem:[#allocation11_spill] sm:$0xff] }
 0x21c   : > { %5073 = vmatprep.mubr.msk.f32.mxu1 %vm984_vm4, %v6440_v24 }
 0x21f   : > { %5074 = vmatmul.mubr.msk.f32.gmra.mrb[22].mxu1 %vm984_vm4, %v7191_v19 }
 0x220   : > { %5076 = vmatprep.mubr.msk.f32.mxu1 %vm984_vm4, %v7192_v4 }
 0x223   : > { %5077 = vmatmul.mubr.msk.f32.gmra.mrb[24].mxu1 %vm984_vm4, %v7193_v54 }
 0x224   : > { %5079 = vmatprep.mubr.msk.f32.mxu1 %vm984_vm4, %v7194_v21 }
 0x227   : > { %5080 = vmatmul.mubr.msk.f32.gmra.mrb[26].mxu1 %vm984_vm4, %v7195_v33 }
 0x228   : > { %5082 = vmatprep.mubr.msk.f32.mxu1 %vm984_vm4, %v7196_v5 }
 0x22b   : > { %5083 = vmatmul.mubr.msk.f32.gmra.mrb[0].mxu1 %vm984_vm4, %v7197_v55 }
 0x22c   : > { %5085 = vmatprep.mubr.msk.f32.mxu1 %vm984_vm4, %v7198_v7 }
 0x22f   : > { %5086 = vmatmul.mubr.msk.f32.gmra.mrb[2].mxu1 %vm984_vm4, %v7199_v18 }
 0x230   : > { %5088 = vmatprep.mubr.msk.f32.mxu1 %vm984_vm4, %v7200_v58 }
 0x233   : > { %5089 = vmatmul.mubr.msk.f32.gmra.mrb[4].mxu1 %vm984_vm4, %v7201_v53 }
 0x234   : > { %5091 = vmatprep.mubr.msk.f32.mxu1 %vm984_vm4, %v7202_v29 }
 0x237   : > { %5092 = vmatmul.mubr.msk.f32.gmra.mrb[6].mxu1 %vm984_vm4, %v7203_v17 }
 0x238   : > { %5094 = vmatprep.mubr.msk.f32.mxu1 %vm984_vm4, %v7204_v15 }
 0x23b   : > { %5095 = vmatmul.mubr.msk.f32.gmra.mrb[8].mxu1 %vm984_vm4, %v7205_v31 }
 0x23c   : > { %5097 = vmatprep.mubr.msk.f32.mxu1 %vm984_vm4, %v6573_v20 }
 0x23f   : > { %5098 = vmatmul.mubr.msk.f32.gmra.mrb[10].mxu1 %vm984_vm4, %v7206_v25 }
 0x240   : > { %5100 = vmatprep.mubr.msk.f32.mxu1 %vm984_vm4, %v6589_v57 }
 0x243   : > { %5101 = vmatmul.mubr.msk.f32.gmra.mrb[12].mxu1 %vm984_vm4, %v6597_v12 }
 0x244   : > { %5103 = vmatprep.mubr.msk.f32.mxu1 %vm984_vm4, %v7207_v16 }
 0x247   : > { %5104 = vmatmul.mubr.msk.f32.gmra.mrb[14].mxu1 %vm984_vm4, %v6612_v43 }
 0x248   : > { %5106 = vmatprep.mubr.msk.f32.mxu1 %vm984_vm4, %v6624_v27 }
 0x24b   : > { %5107 = vmatmul.mubr.msk.f32.gmra.mrb[16].mxu1 %vm984_vm4, %v6635_v40 }
 0x24c   : > { %5109 = vmatprep.mubr.msk.f32.mxu1 %vm984_vm4, %v7208_v39 }
 0x24f   : > { %v6841_v6 = vpop.f32.mrb[44].mxu0  ;;  %5110 = vmatmul.mubr.msk.f32.gmra.mrb[18].mxu1 %vm984_vm4, %v7209_v26 }
 0x250   : > { %v6845_v62 = vpop.f32.mrb[45].mxu0 }
 0x253   : > { %v6847_v28 = vpop.f32.mrb[46].mxu0 }
 0x254   : > { %v6849_v38 = vpop.f32.mrb[47].mxu0 }
 0x257   : > { %v6851_v2 = vpop.f32.mrb[48].mxu0 }
 0x258   : > { %v6853_v36 = vpop.f32.mrb[49].mxu0 }
 0x25b   : > { %v6855_v51 = vpop.f32.mrb[50].mxu0 }
 0x25c   : > { %v6857_v1 = vpop.f32.mrb[51].mxu0 }
 0x25f   : > { %v6859_v63 = vpop.f32.mrb[52].mxu0 }
 0x260   : > { %v6861_v14 = vpop.f32.mrb[53].mxu0 }
 0x263   : > { %v6863_v41 = vpop.f32.mrb[54].mxu0 }
 0x264   : > { %v6865_v32 = vpop.f32.mrb[55].mxu0 }
 0x267   : > { %v6867_v0 = vpop.f32.mrb[56].mxu0 }
 0x268   : > { %v6869_v49 = vpop.f32.mrb[57].mxu0 }
 0x26b   : > { %v6871_v46 = vpop.f32.mrb[58].mxu0 }
 0x26c   : > { %v6873_v47 = vpop.f32.mrb[59].mxu0 }
 0x26f   : > { %v6875_v45 = vpop.f32.mrb[60].mxu0 }
 0x270   : > { %v6877_v60 = vpop.f32.mrb[61].mxu0 }
 0x273   : > { %v6879_v22 = vpop.f32.mrb[62].mxu0 }
 0x274   : > { %v6881_v44 = vpop.f32.mrb[63].mxu0 }
 0x277   : > { %v4842_v24 = vpop.f32.mrb[36].mxu0 }
 0x278   : > { %v2036_v20 = vpop.f32.mrb[37].mxu0 }
 0x27b   : > { %v4845_v56 = vpop.f32.mrb[38].mxu0 }
 0x27c   : > { %v2046_v57 = vpop.f32.mrb[39].mxu0 }
 0x27f   : > { %v4848_v12 = vpop.f32.mrb[40].mxu0 }
 0x280   : > { %v2056_v40 = vpop.f32.mrb[41].mxu0 }
 0x283   : > { %v4851_v43 = vpop.f32.mrb[42].mxu0 }
 0x284   : > { %v2066_v27 = vpop.f32.mrb[43].mxu0 }
 0x2ee   : > { %v5072_v8 = vpop.f32.mrb[20].mxu1 }
 0x2ef   : > { %v5232_v11 = vadd.f32 %v5072_v8, %v4842_v24  ;;  %v3266_v42 = vpop.f32.mrb[21].mxu1 }
 0x2f0   : > { %v5233_v59 = vadd.f32 %v3266_v42, %v2036_v20 }
 0x2f1   : > { %v3441_v30 = vadd.f32 %v5232_v11, %v6886_v10 }
 0x2f2   : > { %v3440_v34 = vadd.f32 %v5233_v59, %v6886_v10  ;;  %v5075_v9 = vpop.f32.mrb[22].mxu1 }
 0x2f3   : > { %v5234_v50 = vadd.f32 %v5075_v9, %v4845_v56  ;;  %v3276_v48 = vpop.f32.mrb[23].mxu1  ;;  %v3469_v3 = vmax.f32 %v3441_v30, 0.0 }
 0x2f4   : > { %v3468_v37 = vmax.f32 %v3440_v34, 0.0  ;;  %v5235_v35 = vadd.f32 %v3276_v48, %v2046_v57 }
 0x2f5   : > { %v3443_v13 = vadd.f32 %v5234_v50, %v6886_v10 }
 0x2f6   : > { %v3442_v23 = vadd.f32 %v5235_v35, %v6886_v10  ;;  %v5078_v52 = vpop.f32.mrb[24].mxu1  ;;  %5116 = vmatprep.mubr.msk.f32.mxu0 %vm984_vm4, %v3468_v37 }
 0x2f7   : > { %v5236_v61 = vadd.f32 %v5078_v52, %v4848_v12  ;;  %v3286_v19 = vpop.f32.mrb[25].mxu1  ;;  %5117 = vmatmul.mubr.msk.f32.vlgmr.msra.gmra.mrb[64].mxu0 %vm984_vm4, %v3469_v3  ;;  %v3471_v21 = vmax.f32 %v3443_v13, 0.0 }
 0x2f8   : > { %v3470_v4 = vmax.f32 %v3442_v23, 0.0  ;;  %v5237_v54 = vadd.f32 %v3286_v19, %v2056_v40 }
 0x2f9   : > { %v3445_v33 = vadd.f32 %v5236_v61, %v6886_v10 }
 0x2fa   : > { %v3444_v5 = vadd.f32 %v5237_v54, %v6886_v10  ;;  %v5081_v55 = vpop.f32.mrb[26].mxu1  ;;  %5119 = vmatprep.mubr.msk.f32.mxu0 %vm984_vm4, %v3470_v4 }
 0x2fb   : > { %v5238_v7 = vadd.f32 %v5081_v55, %v4851_v43  ;;  %v3296_v18 = vpop.f32.mrb[27].mxu1  ;;  %5120 = vmatmul.mubr.msk.f32.gmra.mrb[66].mxu0 %vm984_vm4, %v3471_v21  ;;  %v3473_v29 = vmax.f32 %v3445_v33, 0.0 }
 0x2fc   : > { %v3472_v58 = vmax.f32 %v3444_v5, 0.0  ;;  %v5239_v53 = vadd.f32 %v3296_v18, %v2066_v27 }
 0x2fd   : > { %v3447_v17 = vadd.f32 %v5238_v7, %v6886_v10 }
 0x2fe   : > { %v3446_v15 = vadd.f32 %v5239_v53, %v6886_v10  ;;  %v5084_v31 = vpop.f32.mrb[0].mxu1  ;;  %5122 = vmatprep.mubr.msk.f32.mxu0 %vm984_vm4, %v3472_v58 }
 0x2ff   : > { %v5240_v25 = vadd.f32 %v5084_v31, %v6841_v6  ;;  %v3306_v16 = vpop.f32.mrb[1].mxu1  ;;  %5123 = vmatmul.mubr.msk.f32.gmra.mrb[68].mxu0 %vm984_vm4, %v3473_v29  ;;  %v3475_v24 = vmax.f32 %v3447_v17, 0.0 }
 0x300   : > { %v3474_v39 = vmax.f32 %v3446_v15, 0.0  ;;  %v5241_v26 = vadd.f32 %v3306_v16, %v6845_v62 }
 0x301   : > { %v3449_v20 = vadd.f32 %v5240_v25, %v6886_v10 }
 0x302   : > { %v3448_v56 = vadd.f32 %v5241_v26, %v6886_v10  ;;  %v5087_v57 = vpop.f32.mrb[2].mxu1  ;;  %5125 = vmatprep.mubr.msk.f32.mxu0 %vm984_vm4, %v3474_v39 }
 0x303   : > { %v5242_v12 = vadd.f32 %v5087_v57, %v6847_v28  ;;  %v3316_v40 = vpop.f32.mrb[3].mxu1  ;;  %5126 = vmatmul.mubr.msk.f32.gmra.mrb[70].mxu0 %vm984_vm4, %v3475_v24  ;;  %v3477_v27 = vmax.f32 %v3449_v20, 0.0 }
 0x304   : > { %v3476_v6 = vmax.f32 %v3448_v56, 0.0  ;;  %v5243_v43 = vadd.f32 %v3316_v40, %v6849_v38 }
 0x305   : > { %v3451_v8 = vadd.f32 %v5242_v12, %v6886_v10 }
 0x306   : > { %v3450_v62 = vadd.f32 %v5243_v43, %v6886_v10  ;;  %v5090_v11 = vpop.f32.mrb[4].mxu1  ;;  %5128 = vmatprep.mubr.msk.f32.mxu0 %vm984_vm4, %v3476_v6 }
 0x307   : > { %v5244_v42 = vadd.f32 %v5090_v11, %v6851_v2  ;;  %v3326_v59 = vpop.f32.mrb[5].mxu1  ;;  %5129 = vmatmul.mubr.msk.f32.gmra.mrb[72].mxu0 %vm984_vm4, %v3477_v27  ;;  %v3479_v34 = vmax.f32 %v3451_v8, 0.0 }
 0x308   : > { %v3478_v28 = vmax.f32 %v3450_v62, 0.0  ;;  %v5245_v30 = vadd.f32 %v3326_v59, %v6853_v36 }
 0x309   : > { %v3453_v9 = vadd.f32 %v5244_v42, %v6886_v10 }
 0x30a   : > { %v3452_v38 = vadd.f32 %v5245_v30, %v6886_v10  ;;  %v5093_v50 = vpop.f32.mrb[6].mxu1  ;;  %5131 = vmatprep.mubr.msk.f32.mxu0 %vm984_vm4, %v3478_v28 }
 0x30b   : > { %v5246_v48 = vadd.f32 %v5093_v50, %v6855_v51  ;;  %v3336_v37 = vpop.f32.mrb[7].mxu1  ;;  %5132 = vmatmul.mubr.msk.f32.gmra.mrb[74].mxu0 %vm984_vm4, %v3479_v34  ;;  %v3481_v3 = vmax.f32 %v3453_v9, 0.0 }
 0x30c   : > { %v3480_v2 = vmax.f32 %v3452_v38, 0.0  ;;  %v5247_v35 = vadd.f32 %v3336_v37, %v6857_v1  ;;  %v5470_v38 = vld [vmem:[%s5594_s30 + $0x28] sm:$0xff] }
 0x30d   : > { %v3455_v13 = vadd.f32 %v5246_v48, %v6886_v10  ;;  %v5471_v48 = vld [vmem:[%s5594_s30 + $0x20] sm:$0xff] }
 0x30e   : > { %v3454_v36 = vadd.f32 %v5247_v35, %v6886_v10  ;;  %v5096_v23 = vpop.f32.mrb[8].mxu1  ;;  %5134 = vmatprep.mubr.msk.f32.mxu0 %vm984_vm4, %v3480_v2 }
 0x30f   : > { %v5248_v52 = vadd.f32 %v5096_v23, %v6859_v63  ;;  %v3346_v61 = vpop.f32.mrb[9].mxu1  ;;  %5135 = vmatmul.mubr.msk.f32.gmra.mrb[76].mxu0 %vm984_vm4, %v3481_v3  ;;  %v3483_v4 = vmax.f32 %v3455_v13, 0.0 }
 0x310   : > { %v3482_v51 = vmax.f32 %v3454_v36, 0.0  ;;  %v5249_v19 = vadd.f32 %v3346_v61, %v6861_v14 }
 0x311   : > { %v3457_v54 = vadd.f32 %v5248_v52, %v6886_v10  ;;  %v5472_v52 = vld [vmem:[%s5594_s30 + $0x38] sm:$0xff] }
 0x312   : > { %v3456_v1 = vadd.f32 %v5249_v19, %v6886_v10  ;;  %v5099_v21 = vpop.f32.mrb[10].mxu1  ;;  %5137 = vmatprep.mubr.msk.f32.mxu0 %vm984_vm4, %v3482_v51  ;;  %v5473_v51 = vld [vmem:[%s5594_s30 + $0x30] sm:$0xff] }
 0x313   : > { %v5250_v33 = vadd.f32 %v5099_v21, %v6863_v41  ;;  %v3356_v5 = vpop.f32.mrb[11].mxu1  ;;  %5138 = vmatmul.mubr.msk.f32.gmra.mrb[78].mxu0 %vm984_vm4, %v3483_v4  ;;  %v3485_v7 = vmax.f32 %v3457_v54, 0.0 }
 0x314   : > { %v3484_v63 = vmax.f32 %v3456_v1, 0.0  ;;  %v5251_v55 = vadd.f32 %v3356_v5, %v6865_v32 }
 0x315   : > { %v3459_v18 = vadd.f32 %v5250_v33, %v6886_v10 }
 0x316   : > { %v3458_v14 = vadd.f32 %v5251_v55, %v6886_v10  ;;  %v5102_v58 = vpop.f32.mrb[12].mxu1  ;;  %5140 = vmatprep.mubr.msk.f32.mxu0 %vm984_vm4, %v3484_v63  ;;  %v5474_v63 = vld [vmem:[%s5594_s30 + $0x48] sm:$0xff] }
 0x317   : > { %v5252_v53 = vadd.f32 %v5102_v58, %v6867_v0  ;;  %v3366_v29 = vpop.f32.mrb[13].mxu1  ;;  %5141 = vmatmul.mubr.msk.f32.gmra.mrb[80].mxu0 %vm984_vm4, %v3485_v7  ;;  %v3487_v15 = vmax.f32 %v3459_v18, 0.0  ;;  %v5475_v7 = vld [vmem:[%s5594_s30 + $0x40] sm:$0xff] }
 0x318   : > { %v3486_v41 = vmax.f32 %v3458_v14, 0.0  ;;  %v5253_v17 = vadd.f32 %v3366_v29, %v6869_v49 }
 0x319   : > { %v3461_v31 = vadd.f32 %v5252_v53, %v6886_v10 }
 0x31a   : > { %v3460_v32 = vadd.f32 %v5253_v17, %v6886_v10  ;;  %v5105_v25 = vpop.f32.mrb[14].mxu1  ;;  %5143 = vmatprep.mubr.msk.f32.mxu0 %vm984_vm4, %v3486_v41 }
 0x31b   : > { %v5254_v16 = vadd.f32 %v5105_v25, %v6871_v46  ;;  %v3376_v39 = vpop.f32.mrb[15].mxu1  ;;  %5144 = vmatmul.mubr.msk.f32.gmra.mrb[82].mxu0 %vm984_vm4, %v3487_v15  ;;  %v3489_v24 = vmax.f32 %v3461_v31, 0.0  ;;  %v5476_v15 = vld [vmem:[%s5594_s30 + $0x58] sm:$0xff] }
 0x31c   : > { %v3488_v0 = vmax.f32 %v3460_v32, 0.0  ;;  %v5255_v26 = vadd.f32 %v3376_v39, %v6873_v47  ;;  %v5477_v32 = vld [vmem:[%s5594_s30 + $0x50] sm:$0xff] }
 0x31d   : > { %v3463_v20 = vadd.f32 %v5254_v16, %v6886_v10 }
 0x31e   : > { %v3462_v49 = vadd.f32 %v5255_v26, %v6886_v10  ;;  %v5108_v56 = vpop.f32.mrb[16].mxu1  ;;  %5146 = vmatprep.mubr.msk.f32.mxu0 %vm984_vm4, %v3488_v0 }
 0x31f   : > { %v5256_v57 = vadd.f32 %v5108_v56, %v6875_v45  ;;  %v3386_v12 = vpop.f32.mrb[17].mxu1  ;;  %5147 = vmatmul.mubr.msk.f32.gmra.mrb[84].mxu0 %vm984_vm4, %v3489_v24  ;;  %v3491_v6 = vmax.f32 %v3463_v20, 0.0 }
 0x320   : > { %v3490_v46 = vmax.f32 %v3462_v49, 0.0  ;;  %v5257_v40 = vadd.f32 %v3386_v12, %v6877_v60  ;;  %v5478_v49 = vld [vmem:[%s5594_s30 + $0x68] sm:$0xff] }
 0x321   : > { %v3465_v43 = vadd.f32 %v5256_v57, %v6886_v10  ;;  %v5479_v57 = vld [vmem:[%s5594_s30 + $0x60] sm:$0xff] }
 0x322   : > { %v3464_v47 = vadd.f32 %v5257_v40, %v6886_v10  ;;  %v5111_v27 = vpop.f32.mrb[18].mxu1  ;;  %5149 = vmatprep.mubr.msk.f32.mxu0 %vm984_vm4, %v3490_v46 }
 0x323   : > { %v5258_v8 = vadd.f32 %v5111_v27, %v6879_v22  ;;  %v3396_v62 = vpop.f32.mrb[19].mxu1  ;;  %5150 = vmatmul.mubr.msk.f32.gmra.mrb[86].mxu0 %vm984_vm4, %v3491_v6  ;;  %v3493_v42 = vmax.f32 %v3465_v43, 0.0  ;;  %v6967_v22 = vld [vmem:[%s7097_s7] ss:$0 sm:$0xff] }
 0x324   : > { %v3492_v45 = vmax.f32 %v3464_v47, 0.0  ;;  %v5259_v11 = vadd.f32 %v3396_v62, %v6881_v44 }
 0x325   : > { %v3467_v60 = vadd.f32 %v5258_v8, %v6886_v10  ;;  %v5480_v8 = vld [vmem:[%s5594_s30 + $0x78] sm:$0xff] }
 0x326   : > { %v3466_v59 = vadd.f32 %v5259_v11, %v6886_v10  ;;  %5152 = vmatprep.mubr.msk.f32.mxu0 %vm984_vm4, %v3492_v45  ;;  %v5481_v45 = vld [vmem:[%s5594_s30 + $0x70] sm:$0xff] }
 0x327   : > { %5153 = vmatmul.mubr.msk.f32.gmra.mrb[88].mxu0 %vm984_vm4, %v3493_v42  ;;  %v3495_v30 = vmax.f32 %v3467_v60, 0.0 }
 0x328   : > { %v3494_v28 = vmax.f32 %v3466_v59, 0.0 }
 0x32a   : > { %5155 = vmatprep.mubr.msk.f32.mxu0 %vm984_vm4, %v3494_v28 }
 0x32b   : > { %5156 = vmatmul.mubr.msk.f32.gmra.mrb[90].mxu0 %vm984_vm4, %v3495_v30 }
 0x3ca   : > { %v5118_v44 = vpop.f32.mrb[64].mxu0 }
 0x3cb   : > { %v3664_v10 = vadd.f32 %v5118_v44, %v6967_v22  ;;  %v3658_v34 = vpop.f32.mrb[65].mxu0 }
 0x3cc   : > { %v3659_v9 = vadd.f32 %v6967_v22, %v3658_v34 }
 0x3cd   : > { %v3798_v50 = vadd.f32 %v5470_v38, %v3664_v10  ;;  %v5482_v10 = vld [vmem:[%s5594_s30 + $0x88] sm:$0xff] }
 0x3ce   : > { %v3797_v37 = vadd.f32 %v5471_v48, %v3659_v9  ;;  %v5121_v2 = vpop.f32.mrb[66].mxu0  ;;  %v5483_v9 = vld [vmem:[%s5594_s30 + $0x80] sm:$0xff] }
 0x3cf   : > { %v3826_v35 = vmax.f32 %v3798_v50, 0.0  ;;  %v3674_v3 = vadd.f32 %v5121_v2, %v6967_v22  ;;  %v3668_v13 = vpop.f32.mrb[67].mxu0 }
 0x3d0   : > { %v3825_v36 = vmax.f32 %v3797_v37, 0.0  ;;  %v3669_v23 = vadd.f32 %v6967_v22, %v3668_v13  ;;  %v5484_v13 = vld [vmem:[%s5594_s30 + $0x98] sm:$0xff] }
 0x3d1   : > { %3854 = vst.msk [vmem:[%s6976_s25 + $0x8] sm:$0xff] %vm389_vm0, %v3826_v35  ;;  %v3800_v61 = vadd.f32 %v5472_v52, %v3674_v3 }
 0x3d2   : > { %3853 = vst.msk [vmem:[%s6976_s25] sm:$0xff] %vm389_vm0, %v3825_v36  ;;  %v3799_v19 = vadd.f32 %v5473_v51, %v3669_v23  ;;  %v5124_v4 = vpop.f32.mrb[68].mxu0  ;;  %v5485_v23 = vld [vmem:[%s5594_s30 + $0x90] sm:$0xff] }
 0x3d3   : > { %v3828_v54 = vmax.f32 %v3800_v61, 0.0  ;;  %v3684_v1 = vadd.f32 %v5124_v4, %v6967_v22  ;;  %v3678_v21 = vpop.f32.mrb[69].mxu0 }
 0x3d4   : > { %v3827_v33 = vmax.f32 %v3799_v19, 0.0  ;;  %v3679_v5 = vadd.f32 %v6967_v22, %v3678_v21  ;;  %v5486_v21 = vld [vmem:[%s5594_s30 + $0xa8] sm:$0xff] }
 0x3d5   : > { %3856 = vst.msk [vmem:[%s6976_s25 + $0x18] sm:$0xff] %vm389_vm0, %v3828_v54  ;;  %v3802_v55 = vadd.f32 %v5474_v63, %v3684_v1 }
 0x3d6   : > { %3855 = vst.msk [vmem:[%s6976_s25 + $0x10] sm:$0xff] %vm389_vm0, %v3827_v33  ;;  %v3801_v18 = vadd.f32 %v5475_v7, %v3679_v5  ;;  %v5127_v14 = vpop.f32.mrb[70].mxu0  ;;  %v5487_v5 = vld [vmem:[%s5594_s30 + $0xa0] sm:$0xff] }
 0x3d7   : > { %v3830_v58 = vmax.f32 %v3802_v55, 0.0  ;;  %v3694_v53 = vadd.f32 %v5127_v14, %v6967_v22  ;;  %v3688_v29 = vpop.f32.mrb[71].mxu0 }
 0x3d8   : > { %v3829_v41 = vmax.f32 %v3801_v18, 0.0  ;;  %v3689_v17 = vadd.f32 %v6967_v22, %v3688_v29  ;;  %v5488_v29 = vld [vmem:[%s5594_s30 + $0xb8] sm:$0xff] }
 0x3d9   : > { %3858 = vst.msk [vmem:[%s6976_s25 + $0x28] sm:$0xff] %vm389_vm0, %v3830_v58  ;;  %v3804_v31 = vadd.f32 %v5476_v15, %v3694_v53 }
 0x3da   : > { %3857 = vst.msk [vmem:[%s6976_s25 + $0x20] sm:$0xff] %vm389_vm0, %v3829_v41  ;;  %v3803_v25 = vadd.f32 %v5477_v32, %v3689_v17  ;;  %v5130_v16 = vpop.f32.mrb[72].mxu0  ;;  %v5489_v17 = vld [vmem:[%s5594_s30 + $0xb0] sm:$0xff] }
 0x3db   : > { %v3832_v39 = vmax.f32 %v3804_v31, 0.0  ;;  %v3704_v0 = vadd.f32 %v5130_v16, %v6967_v22  ;;  %v3698_v26 = vpop.f32.mrb[73].mxu0 }
 0x3dc   : > { %v3831_v24 = vmax.f32 %v3803_v25, 0.0  ;;  %v3699_v20 = vadd.f32 %v6967_v22, %v3698_v26  ;;  %v5490_v26 = vld [vmem:[%s5594_s30 + $0xc8] sm:$0xff] }
 0x3dd   : > { %3860 = vst.msk [vmem:[%s6976_s25 + $0x38] sm:$0xff] %vm389_vm0, %v3832_v39  ;;  %v3806_v56 = vadd.f32 %v5478_v49, %v3704_v0 }
 0x3de   : > { %3859 = vst.msk [vmem:[%s6976_s25 + $0x30] sm:$0xff] %vm389_vm0, %v3831_v24  ;;  %v3805_v12 = vadd.f32 %v5479_v57, %v3699_v20  ;;  %v5133_v46 = vpop.f32.mrb[74].mxu0  ;;  %v5491_v20 = vld [vmem:[%s5594_s30 + $0xc0] sm:$0xff] }
 0x3df   : > { %v3834_v40 = vmax.f32 %v3806_v56, 0.0  ;;  %v3714_v6 = vadd.f32 %v5133_v46, %v6967_v22  ;;  %v3708_v43 = vpop.f32.mrb[75].mxu0 }
 0x3e0   : > { %v3833_v47 = vmax.f32 %v3805_v12, 0.0  ;;  %v3709_v27 = vadd.f32 %v6967_v22, %v3708_v43  ;;  %v5492_v43 = vld [vmem:[%s5594_s30 + $0xd8] sm:$0xff] }
 0x3e1   : > { %3862 = vst.msk [vmem:[%s6976_s25 + $0x48] sm:$0xff] %vm389_vm0, %v3834_v40  ;;  %v3808_v62 = vadd.f32 %v5480_v8, %v3714_v6 }
 0x3e2   : > { %3861 = vst.msk [vmem:[%s6976_s25 + $0x40] sm:$0xff] %vm389_vm0, %v3833_v47  ;;  %v3807_v11 = vadd.f32 %v5481_v45, %v3709_v27  ;;  %v5136_v42 = vpop.f32.mrb[76].mxu0  ;;  %v5493_v27 = vld [vmem:[%s5594_s30 + $0xd0] sm:$0xff] }
 0x3e3   : > { %v3836_v60 = vmax.f32 %v3808_v62, 0.0  ;;  %v3724_v59 = vadd.f32 %v5136_v42, %v6967_v22  ;;  %v3718_v28 = vpop.f32.mrb[77].mxu0 }
 0x3e4   : > { %v3835_v30 = vmax.f32 %v3807_v11, 0.0  ;;  %v3719_v44 = vadd.f32 %v6967_v22, %v3718_v28  ;;  %v5494_v28 = vld [vmem:[%s5594_s30 + $0xe8] sm:$0xff] }
 0x3e5   : > { %3864 = vst.msk [vmem:[%s6976_s25 + $0x58] sm:$0xff] %vm389_vm0, %v3836_v60  ;;  %v3810_v34 = vadd.f32 %v5482_v10, %v3724_v59 }
 0x3e6   : > { %3863 = vst.msk [vmem:[%s6976_s25 + $0x50] sm:$0xff] %vm389_vm0, %v3835_v30  ;;  %v3809_v38 = vadd.f32 %v5483_v9, %v3719_v44  ;;  %v5139_v50 = vpop.f32.mrb[78].mxu0  ;;  %v5495_v44 = vld [vmem:[%s5594_s30 + $0xe0] sm:$0xff] }
 0x3e7   : > { %v3838_v48 = vmax.f32 %v3810_v34, 0.0  ;;  %v3734_v37 = vadd.f32 %v5139_v50, %v6967_v22  ;;  %v3728_v2 = vpop.f32.mrb[79].mxu0 }
 0x3e8   : > { %v3837_v35 = vmax.f32 %v3809_v38, 0.0  ;;  %v3729_v3 = vadd.f32 %v6967_v22, %v3728_v2  ;;  %v5496_v2 = vld [vmem:[%s5594_s30 + $0xf8] sm:$0xff] }
 0x3e9   : > { %3866 = vst.msk [vmem:[%s6976_s25 + $0x68] sm:$0xff] %vm389_vm0, %v3838_v48  ;;  %v3812_v36 = vadd.f32 %v5484_v13, %v3734_v37 }
 0x3ea   : > { %3865 = vst.msk [vmem:[%s6976_s25 + $0x60] sm:$0xff] %vm389_vm0, %v3837_v35  ;;  %v3811_v52 = vadd.f32 %v5485_v23, %v3729_v3  ;;  %v5142_v61 = vpop.f32.mrb[80].mxu0  ;;  %v5497_v3 = vld [vmem:[%s5594_s30 + $0xf0] sm:$0xff] }
 0x3eb   : > { %v3840_v51 = vmax.f32 %v3812_v36, 0.0  ;;  %v3744_v19 = vadd.f32 %v5142_v61, %v6967_v22  ;;  %v3738_v4 = vpop.f32.mrb[81].mxu0 }
 0x3ec   : > { %v3839_v54 = vmax.f32 %v3811_v52, 0.0  ;;  %v3739_v1 = vadd.f32 %v6967_v22, %v3738_v4 }
 0x3ed   : > { %3868 = vst.msk [vmem:[%s6976_s25 + $0x78] sm:$0xff] %vm389_vm0, %v3840_v51  ;;  %v3814_v33 = vadd.f32 %v5486_v21, %v3744_v19 }
 0x3ee   : > { %3867 = vst.msk [vmem:[%s6976_s25 + $0x70] sm:$0xff] %vm389_vm0, %v3839_v54  ;;  %v3813_v63 = vadd.f32 %v5487_v5, %v3739_v1  ;;  %v5145_v55 = vpop.f32.mrb[82].mxu0 }
 0x3ef   : > { %v3842_v7 = vmax.f32 %v3814_v33, 0.0  ;;  %v3754_v18 = vadd.f32 %v5145_v55, %v6967_v22  ;;  %v3748_v14 = vpop.f32.mrb[83].mxu0 }
 0x3f0   : > { %v3841_v58 = vmax.f32 %v3813_v63, 0.0  ;;  %v3749_v53 = vadd.f32 %v6967_v22, %v3748_v14 }
 0x3f1   : > { %3870 = vst.msk [vmem:[%s6976_s25 + $0x88] sm:$0xff] %vm389_vm0, %v3842_v7  ;;  %v3816_v41 = vadd.f32 %v5488_v29, %v3754_v18 }
 0x3f2   : > { %3869 = vst.msk [vmem:[%s6976_s25 + $0x80] sm:$0xff] %vm389_vm0, %v3841_v58  ;;  %v3815_v15 = vadd.f32 %v5489_v17, %v3749_v53  ;;  %v5148_v31 = vpop.f32.mrb[84].mxu0 }
 0x3f3   : > { %v3844_v32 = vmax.f32 %v3816_v41, 0.0  ;;  %v3764_v25 = vadd.f32 %v5148_v31, %v6967_v22  ;;  %v3758_v16 = vpop.f32.mrb[85].mxu0 }
 0x3f4   : > { %v3843_v39 = vmax.f32 %v3815_v15, 0.0  ;;  %v3759_v0 = vadd.f32 %v6967_v22, %v3758_v16 }
 0x3f5   : > { %3872 = vst.msk [vmem:[%s6976_s25 + $0x98] sm:$0xff] %vm389_vm0, %v3844_v32  ;;  %v3818_v24 = vadd.f32 %v5490_v26, %v3764_v25 }
 0x3f6   : > { %3871 = vst.msk [vmem:[%s6976_s25 + $0x90] sm:$0xff] %vm389_vm0, %v3843_v39  ;;  %v3817_v49 = vadd.f32 %v5491_v20, %v3759_v0  ;;  %v5151_v56 = vpop.f32.mrb[86].mxu0 }
 0x3f7   : > { %v3846_v57 = vmax.f32 %v3818_v24, 0.0  ;;  %v3774_v12 = vadd.f32 %v5151_v56, %v6967_v22  ;;  %v3768_v46 = vpop.f32.mrb[87].mxu0 }
 0x3f8   : > { %v3845_v40 = vmax.f32 %v3817_v49, 0.0  ;;  %v3769_v6 = vadd.f32 %v6967_v22, %v3768_v46 }
 0x3f9   : > { %3874 = vst.msk [vmem:[%s6976_s25 + $0xa8] sm:$0xff] %vm389_vm0, %v3846_v57  ;;  %v3820_v47 = vadd.f32 %v5492_v43, %v3774_v12 }
 0x3fa   : > { %3873 = vst.msk [vmem:[%s6976_s25 + $0xa0] sm:$0xff] %vm389_vm0, %v3845_v40  ;;  %v3819_v8 = vadd.f32 %v5493_v27, %v3769_v6  ;;  %v5154_v62 = vpop.f32.mrb[88].mxu0 }
 0x3fb   : > { %v3848_v45 = vmax.f32 %v3820_v47, 0.0  ;;  %v3784_v11 = vadd.f32 %v5154_v62, %v6967_v22  ;;  %v3778_v42 = vpop.f32.mrb[89].mxu0 }
 0x3fc   : > { %v3847_v60 = vmax.f32 %v3819_v8, 0.0  ;;  %v3779_v59 = vadd.f32 %v6967_v22, %v3778_v42 }
 0x3fd   : > { %3876 = vst.msk [vmem:[%s6976_s25 + $0xb8] sm:$0xff] %vm389_vm0, %v3848_v45  ;;  %v3822_v30 = vadd.f32 %v5494_v28, %v3784_v11 }
 0x3fe   : > { %3875 = vst.msk [vmem:[%s6976_s25 + $0xb0] sm:$0xff] %vm389_vm0, %v3847_v60  ;;  %v3821_v10 = vadd.f32 %v5495_v44, %v3779_v59  ;;  %v5157_v34 = vpop.f32.mrb[90].mxu0 }
 0x3ff   : > { %v3850_v9 = vmax.f32 %v3822_v30, 0.0  ;;  %v3794_v38 = vadd.f32 %v5157_v34, %v6967_v22  ;;  %v3788_v50 = vpop.f32.mrb[91].mxu0 }
 0x400   : > { %v3849_v48 = vmax.f32 %v3821_v10, 0.0  ;;  %v3789_v37 = vadd.f32 %v6967_v22, %v3788_v50 }
 0x401   : > { %3878 = vst.msk [vmem:[%s6976_s25 + $0xc8] sm:$0xff] %vm389_vm0, %v3850_v9  ;;  %v3824_v35 = vadd.f32 %v5496_v2, %v3794_v38 }
 0x402   : > { %3877 = vst.msk [vmem:[%s6976_s25 + $0xc0] sm:$0xff] %vm389_vm0, %v3849_v48  ;;  %v3823_v13 = vadd.f32 %v5497_v3, %v3789_v37 }
 0x403   : > { %v3852_v36 = vmax.f32 %v3824_v35, 0.0 }
 0x404   : > { %v3851_v23 = vmax.f32 %v3823_v13, 0.0 }
 0x405   : > { %3880 = vst.msk [vmem:[%s6976_s25 + $0xd8] sm:$0xff] %vm389_vm0, %v3852_v36 }
 0x406   : > { %3879 = vst.msk [vmem:[%s6976_s25 + $0xd0] sm:$0xff] %vm389_vm0, %v3851_v23 }
 0x407 PF: > { %s18_s27 = sadd.s32 1, %s5504_s27  }
 0x408   : > { %p15_p4 = scmp.ge.s32.totalorder %s18_s27, 4  }
 0x40a   :  { %17 = sbr.rel (!%p15_p4) target bundleno = 1 (0x1), region = 90 }

</bundles_post_ra>
